<compile_context>
chip_gen: v7x
topology: tpu7x:2x2x1
jax: 0.10.0
libtpu: 0.0.40
codegen_flags: <defaults>
</compile_context>

<pallas_src>
import functools
import math

import jax
import jax.numpy as jnp
from jax.experimental import pallas as pl
from jax.experimental.pallas import tpu as pltpu

# ---------------- config (small synthetic stand-in for MiniLM) ----------------
BATCH = 2
SEQ = 8
HIDDEN = 32
NUM_HEADS = 2
HEAD_DIM = HIDDEN // NUM_HEADS
INTER = 64
NUM_LAYERS = 2
VOCAB = 50
MAX_POS = 64
NUM_LABELS = 2
EPSILON = 5.0          # MadlibModel default epsilon=5 (Gamma rate)
LN_EPS = 1e-12         # BERT LayerNorm eps
NEG_INF = -1e9

# rows of the packed per-layer vector slab (L, 8, INTER), each vector at lane offset 0
ROW_BO, ROW_LN1G, ROW_LN1B, ROW_B1, ROW_B2, ROW_LN2G, ROW_LN2B = range(7)


def _layernorm(x, gamma, beta):
    mean = jnp.mean(x, axis=-1, keepdims=True)
    var = jnp.mean((x - mean) ** 2, axis=-1, keepdims=True)
    return (x - mean) * jax.lax.rsqrt(var + LN_EPS) * gamma + beta


def _gelu(x):
    # TODO(synk): HF BERT uses exact erf-GELU; tanh approximation used here for
    # guaranteed Mosaic lowering of the elementwise path.
    c = math.sqrt(2.0 / math.pi)
    return 0.5 * x * (1.0 + jnp.tanh(c * (x + 0.044715 * x * x * x)))


# ---------------------------------------------------------------------------
# Single fused kernel, no grid.  The activation carry is a local value (never
# leaves VMEM / vregs); layers are a static Python loop over stacked weights.
# ---------------------------------------------------------------------------
def fused_madlib_kernel(
        # stacked per-layer weights
        wqkv_ref,   # (L, NH*3, HIDDEN, dh)  bf16, proj order q,k,v per head
        bqkv_ref,   # (L, NH*3, 1, dh)       f32
        wo_ref,     # (L, NH, dh, HIDDEN)    bf16
        w1_ref,     # (L, HIDDEN, INTER)     bf16
        w2_ref,     # (L, INTER, HIDDEN)     bf16
        lvec_ref,   # (L, 8, INTER)          f32 packed small vectors
        # embedding-phase inputs
        word_ref, pos_ref, type_ref, v_ref, mag_ref, embg_ref, embb_ref,
        # additive attention bias (N, N): key padding + block-diagonal batch mask
        bias_ref,
        # head weights
        wp_ref, bp_ref, wc_ref, bc_ref,
        # output
        out_ref,
        *, num_layers, num_heads, batch, seq):
    n, hidden = word_ref.shape
    dh = hidden // num_heads
    scale = 1.0 / math.sqrt(dh)
    bf16 = jnp.bfloat16

    # ---- noisy embedding: word + (l * v / ||v||) + pos + type, then LayerNorm ----
    v = v_ref[...]
    ss = jnp.sum(v * v, axis=-1, keepdims=True)
    noise = mag_ref[...] * v * jax.lax.rsqrt(ss + 1e-12)          # EUP rsqrt
    e = word_ref[...] + noise + pos_ref[...] + type_ref[...]
    x = _layernorm(e, embg_ref[...], embb_ref[...])               # (N, H) f32 carry

    bias = bias_ref[...]                                          # (N, N)

    # ---- encoder layers (static unrolled loop; ref[l] leading-axis index is free) ----
    for l in range(num_layers):
        bo = lvec_ref[l, ROW_BO:ROW_BO + 1, :hidden]
        ln1g = lvec_ref[l, ROW_LN1G:ROW_LN1G + 1, :hidden]
        ln1b = lvec_ref[l, ROW_LN1B:ROW_LN1B + 1, :hidden]
        b1 = lvec_ref[l, ROW_B1:ROW_B1 + 1, :]
        b2 = lvec_ref[l, ROW_B2:ROW_B2 + 1, :hidden]
        ln2g = lvec_ref[l, ROW_LN2G:ROW_LN2G + 1, :hidden]
        ln2b = lvec_ref[l, ROW_LN2B:ROW_LN2B + 1, :hidden]

        xb = x.astype(bf16)                                       # bf16 MXU feed
        attn = jnp.zeros((n, hidden), jnp.float32)
        for h in range(num_heads):                                # static, tiny
            qh = jnp.dot(xb, wqkv_ref[l, h * 3 + 0],
                         preferred_element_type=jnp.float32) + bqkv_ref[l, h * 3 + 0]
            kh = jnp.dot(xb, wqkv_ref[l, h * 3 + 1],
                         preferred_element_type=jnp.float32) + bqkv_ref[l, h * 3 + 1]
            vh = jnp.dot(xb, wqkv_ref[l, h * 3 + 2],
                         preferred_element_type=jnp.float32) + bqkv_ref[l, h * 3 + 2]

            # flat (N, N) scores; batch structure handled by the additive bias
            s = jax.lax.dot_general(qh.astype(bf16), kh.astype(bf16),
                                    (((1,), (1,)), ((), ())),
                                    preferred_element_type=jnp.float32) * scale
            s = s + bias
            s = s - jnp.max(s, axis=-1, keepdims=True)
            p = jnp.exp(s)
            p = p / jnp.sum(p, axis=-1, keepdims=True)            # exact softmax

            ctx = jnp.dot(p.astype(bf16), vh.astype(bf16),
                          preferred_element_type=jnp.float32)     # (N, dh)
            # fold this head straight into the output projection (no lane concat)
            attn = attn + jnp.dot(ctx.astype(bf16), wo_ref[l, h],
                                  preferred_element_type=jnp.float32)

        attn = attn + bo
        h1 = _layernorm(attn + x, ln1g, ln1b)

        inter = _gelu(jnp.dot(h1.astype(bf16), w1_ref[l],
                              preferred_element_type=jnp.float32) + b1)
        ffn = jnp.dot(inter.astype(bf16), w2_ref[l],
                      preferred_element_type=jnp.float32) + b2
        x = _layernorm(ffn + h1, ln2g, ln2b)

    # ---- pooler (tanh on CLS token) + classifier -> logits ----
    xcls = x.reshape(batch, seq, hidden)[:, 0, :]                 # (B, H)
    pooled = jnp.tanh(jnp.dot(xcls.astype(bf16), wp_ref[...],
                              preferred_element_type=jnp.float32) + bp_ref[...])
    out_ref[...] = (jnp.dot(pooled.astype(bf16), wc_ref[...],
                            preferred_element_type=jnp.float32) + bc_ref[...])


# ---------------------------------------------------------------------------
# Parameter init (deterministic synthetic weights; BERT-style N(0, 0.02)).
# Matmul weights are stored bf16 (MXU feed); biases / LN params stay f32.
# ---------------------------------------------------------------------------
def init_params(key):
    def nrm(k, shape, dtype=jnp.float32):
        return (0.02 * jax.random.normal(k, shape)).astype(dtype)

    ks = jax.random.split(key, 9)
    L, H, NH, DH, I = NUM_LAYERS, HIDDEN, NUM_HEADS, HEAD_DIM, INTER

    # packed per-layer vector slab (biases zero, LN gammas one)
    lvecs = jnp.zeros((L, 8, I), jnp.float32)
    lvecs = lvecs.at[:, ROW_LN1G, :H].set(1.0)
    lvecs = lvecs.at[:, ROW_LN2G, :H].set(1.0)

    return {
        "word_emb": nrm(ks[0], (VOCAB, H)),
        "pos_emb": nrm(ks[1], (MAX_POS, H)),
        "type_emb": nrm(ks[2], (2, H)),
        "emb_ln_g": jnp.ones((1, H), jnp.float32),
        "emb_ln_b": jnp.zeros((1, H), jnp.float32),
        "pooler_w": nrm(ks[3], (H, H), jnp.bfloat16),
        "pooler_b": jnp.zeros((1, H), jnp.float32),
        "cls_w": nrm(ks[4], (H, NUM_LABELS), jnp.bfloat16),
        "cls_b": jnp.zeros((1, NUM_LABELS), jnp.float32),
        # per-(head, proj) Q/K/V weights; proj order q,k,v within each head
        "wqkv": nrm(ks[5], (L, NH * 3, H, DH), jnp.bfloat16),
        "bqkv": jnp.zeros((L, NH * 3, 1, DH), jnp.float32),
        # per-head output projection rows
        "wo": nrm(ks[6], (L, NH, DH, H), jnp.bfloat16),
        "w1": nrm(ks[7], (L, H, I), jnp.bfloat16),
        "w2": nrm(ks[8], (L, I, H), jnp.bfloat16),
        "lvecs": lvecs,
    }


# ---------------------------------------------------------------------------
# Forward = MadlibModel.forward(input_ids, attention_mask) -> logits
# ---------------------------------------------------------------------------
def madlib_forward(params, input_ids, attention_mask, noise_key):
    B, S = input_ids.shape
    N = B * S

    # ---- glue: embedding gathers + RNG sampling (plain JAX, outside kernel) ----
    word = jnp.take(params["word_emb"], input_ids.reshape(-1), axis=0)    # (N, H)
    pos = jnp.broadcast_to(params["pos_emb"][:S][None, :, :],
                           (B, S, HIDDEN)).reshape(N, HIDDEN)
    tok_type = params["type_emb"][0:1]                                    # (1, H)
    # TODO(synk): token_type_ids hardcoded to segment 0 (single-segment input).

    kv, kg = jax.random.split(noise_key)
    v_noise = jax.random.normal(kv, (N, HIDDEN), jnp.float32)
    # Gamma(concentration=embed_dim, rate=epsilon) == Gamma(a, rate=1) / epsilon
    magnitude = (jax.random.gamma(kg, a=float(HIDDEN), shape=(N,)) /
                 EPSILON).astype(jnp.float32).reshape(N, 1)

    # additive attention bias on flat (N, N) scores:
    # 0 where (same batch AND key not padded), else -1e9 (HF-style key masking
    # plus block-diagonal batch structure for the flattened score matmul).
    key_keep = attention_mask.astype(jnp.float32).reshape(N)              # (N,)
    batch_ids = jnp.repeat(jnp.arange(B), S)                              # (N,)
    same_batch = (batch_ids[:, None] == batch_ids[None, :]).astype(jnp.float32)
    attn_bias = (1.0 - same_batch * key_keep[None, :]) * NEG_INF          # (N, N)

    kernel = functools.partial(fused_madlib_kernel,
                               num_layers=NUM_LAYERS, num_heads=NUM_HEADS,
                               batch=B, seq=S)

    vmem_spec = pl.BlockSpec(memory_space=pltpu.MemorySpace.VMEM)
    n_inputs = 18

    logits = pl.pallas_call(
        kernel,
        out_shape=jax.ShapeDtypeStruct((B, NUM_LABELS), jnp.float32),
        in_specs=[vmem_spec] * n_inputs,
        out_specs=vmem_spec,
    )(
        params["wqkv"], params["bqkv"], params["wo"],
        params["w1"], params["w2"], params["lvecs"],
        word, pos, tok_type, v_noise, magnitude,
        params["emb_ln_g"], params["emb_ln_b"],
        attn_bias,
        params["pooler_w"], params["pooler_b"],
        params["cls_w"], params["cls_b"],
    )
    return logits


if __name__ == "__main__":
    root = jax.random.PRNGKey(0)
    k_param, k_ids, k_noise = jax.random.split(root, 3)

    params = init_params(k_param)
    input_ids = jax.random.randint(k_ids, (BATCH, SEQ), 0, VOCAB, dtype=jnp.int32)
    attention_mask = jnp.ones((BATCH, SEQ), jnp.int32)
    attention_mask = attention_mask.at[1, SEQ - 2:].set(0)      # pad tail of sample 1

    fwd = jax.jit(madlib_forward)
    logits = fwd(params, input_ids, attention_mask, k_noise)
    logits = jax.block_until_ready(logits)

    assert logits.shape == (BATCH, NUM_LABELS)
    assert bool(jnp.all(jnp.isfinite(logits)))
    print("KERNEL_OK")
</pallas_src>

<mosaic_0001>
module attributes {stable_mosaic.version = 11 : i64} {
  func.func @fused_madlib_kernel(%arg0: memref<2x6x32x16xbf16, #tpu.memory_space<vmem>>, %arg1: memref<2x6x1x16xf32, #tpu.memory_space<vmem>>, %arg2: memref<2x2x16x32xbf16, #tpu.memory_space<vmem>>, %arg3: memref<2x32x64xbf16, #tpu.memory_space<vmem>>, %arg4: memref<2x64x32xbf16, #tpu.memory_space<vmem>>, %arg5: memref<2x8x64xf32, #tpu.memory_space<vmem>>, %arg6: memref<16x32xf32, #tpu.memory_space<vmem>>, %arg7: memref<16x32xf32, #tpu.memory_space<vmem>>, %arg8: memref<1x32xf32, #tpu.memory_space<vmem>>, %arg9: memref<16x32xf32, #tpu.memory_space<vmem>>, %arg10: memref<16x1xf32, #tpu.memory_space<vmem>>, %arg11: memref<1x32xf32, #tpu.memory_space<vmem>>, %arg12: memref<1x32xf32, #tpu.memory_space<vmem>>, %arg13: memref<16x16xf32, #tpu.memory_space<vmem>>, %arg14: memref<32x32xbf16, #tpu.memory_space<vmem>>, %arg15: memref<1x32xf32, #tpu.memory_space<vmem>>, %arg16: memref<32x2xbf16, #tpu.memory_space<vmem>>, %arg17: memref<1x2xf32, #tpu.memory_space<vmem>>, %arg18: memref<2x2xf32, #tpu.memory_space<vmem>>) attributes {dimension_semantics = [], scalar_prefetch = 0 : i64, scratch_operands = 0 : i64, tpu.core_type = #tpu.core_type<tc>} {
    %c0 = arith.constant 0 : index
    %c0_0 = arith.constant 0 : index
    %0 = vector.load %arg9[%c0, %c0_0] : memref<16x32xf32, #tpu.memory_space<vmem>>, vector<16x32xf32>
    %1 = arith.mulf %0, %0 : vector<16x32xf32>
    %cst = arith.constant dense<0.000000e+00> : vector<16xf32>
    %2 = vector.multi_reduction <add>, %1, %cst [1] : vector<16x32xf32> to vector<16xf32>
    %3 = vector.shape_cast %2 : vector<16xf32> to vector<16x1xf32>
    %c0_1 = arith.constant 0 : index
    %c0_2 = arith.constant 0 : index
    %4 = vector.load %arg10[%c0_1, %c0_2] : memref<16x1xf32, #tpu.memory_space<vmem>>, vector<16x1xf32>
    %5 = vector.broadcast %4 : vector<16x1xf32> to vector<16x32xf32>
    %6 = arith.mulf %5, %0 : vector<16x32xf32>
    %cst_3 = arith.constant 9.99999996E-13 : f32
    %7 = vector.broadcast %cst_3 : f32 to vector<16x1xf32>
    %8 = arith.addf %3, %7 : vector<16x1xf32>
    %9 = math.rsqrt %8 : vector<16x1xf32>
    %10 = vector.broadcast %9 : vector<16x1xf32> to vector<16x32xf32>
    %11 = arith.mulf %6, %10 : vector<16x32xf32>
    %c0_4 = arith.constant 0 : index
    %c0_5 = arith.constant 0 : index
    %12 = vector.load %arg6[%c0_4, %c0_5] : memref<16x32xf32, #tpu.memory_space<vmem>>, vector<16x32xf32>
    %13 = arith.addf %12, %11 : vector<16x32xf32>
    %c0_6 = arith.constant 0 : index
    %c0_7 = arith.constant 0 : index
    %14 = vector.load %arg7[%c0_6, %c0_7] : memref<16x32xf32, #tpu.memory_space<vmem>>, vector<16x32xf32>
    %15 = arith.addf %13, %14 : vector<16x32xf32>
    %c0_8 = arith.constant 0 : index
    %c0_9 = arith.constant 0 : index
    %16 = vector.load %arg8[%c0_8, %c0_9] : memref<1x32xf32, #tpu.memory_space<vmem>>, vector<1x32xf32>
    %17 = vector.broadcast %16 : vector<1x32xf32> to vector<16x32xf32>
    %18 = arith.addf %15, %17 : vector<16x32xf32>
    %c0_10 = arith.constant 0 : index
    %c0_11 = arith.constant 0 : index
    %19 = vector.load %arg11[%c0_10, %c0_11] : memref<1x32xf32, #tpu.memory_space<vmem>>, vector<1x32xf32>
    %c0_12 = arith.constant 0 : index
    %c0_13 = arith.constant 0 : index
    %20 = vector.load %arg12[%c0_12, %c0_13] : memref<1x32xf32, #tpu.memory_space<vmem>>, vector<1x32xf32>
    %cst_14 = arith.constant dense<0.000000e+00> : vector<16xf32>
    %21 = vector.multi_reduction <add>, %18, %cst_14 [1] : vector<16x32xf32> to vector<16xf32>
    %22 = vector.shape_cast %21 : vector<16xf32> to vector<16x1xf32>
    %cst_15 = arith.constant 3.200000e+01 : f32
    %23 = vector.broadcast %cst_15 : f32 to vector<16x1xf32>
    %24 = arith.divf %22, %23 : vector<16x1xf32>
    %25 = vector.broadcast %24 : vector<16x1xf32> to vector<16x32xf32>
    %26 = arith.subf %18, %25 : vector<16x32xf32>
    %27 = arith.mulf %26, %26 : vector<16x32xf32>
    %cst_16 = arith.constant dense<0.000000e+00> : vector<16xf32>
    %28 = vector.multi_reduction <add>, %27, %cst_16 [1] : vector<16x32xf32> to vector<16xf32>
    %29 = vector.shape_cast %28 : vector<16xf32> to vector<16x1xf32>
    %cst_17 = arith.constant 3.200000e+01 : f32
    %30 = vector.broadcast %cst_17 : f32 to vector<16x1xf32>
    %31 = arith.divf %29, %30 : vector<16x1xf32>
    %32 = vector.broadcast %24 : vector<16x1xf32> to vector<16x32xf32>
    %33 = arith.subf %18, %32 : vector<16x32xf32>
    %cst_18 = arith.constant 9.99999996E-13 : f32
    %34 = vector.broadcast %cst_18 : f32 to vector<16x1xf32>
    %35 = arith.addf %31, %34 : vector<16x1xf32>
    %36 = math.rsqrt %35 : vector<16x1xf32>
    %37 = vector.broadcast %36 : vector<16x1xf32> to vector<16x32xf32>
    %38 = arith.mulf %33, %37 : vector<16x32xf32>
    %39 = vector.broadcast %19 : vector<1x32xf32> to vector<16x32xf32>
    %40 = arith.mulf %38, %39 : vector<16x32xf32>
    %41 = vector.broadcast %20 : vector<1x32xf32> to vector<16x32xf32>
    %42 = arith.addf %40, %41 : vector<16x32xf32>
    %c0_19 = arith.constant 0 : index
    %c0_20 = arith.constant 0 : index
    %43 = vector.load %arg13[%c0_19, %c0_20] : memref<16x16xf32, #tpu.memory_space<vmem>>, vector<16x16xf32>
    %c0_21 = arith.constant 0 : index
    %c0_22 = arith.constant 0 : index
    %c0_23 = arith.constant 0 : index
    %44 = vector.load %arg5[%c0_21, %c0_22, %c0_23] : memref<2x8x64xf32, #tpu.memory_space<vmem>>, vector<1x1x32xf32>
    %45 = vector.shape_cast %44 : vector<1x1x32xf32> to vector<1x32xf32>
    %c0_24 = arith.constant 0 : index
    %c1 = arith.constant 1 : index
    %c0_25 = arith.constant 0 : index
    %46 = vector.load %arg5[%c0_24, %c1, %c0_25] : memref<2x8x64xf32, #tpu.memory_space<vmem>>, vector<1x1x32xf32>
    %47 = vector.shape_cast %46 : vector<1x1x32xf32> to vector<1x32xf32>
    %c0_26 = arith.constant 0 : index
    %c2 = arith.constant 2 : index
    %c0_27 = arith.constant 0 : index
    %48 = vector.load %arg5[%c0_26, %c2, %c0_27] : memref<2x8x64xf32, #tpu.memory_space<vmem>>, vector<1x1x32xf32>
    %49 = vector.shape_cast %48 : vector<1x1x32xf32> to vector<1x32xf32>
    %c0_28 = arith.constant 0 : index
    %c3 = arith.constant 3 : index
    %c0_29 = arith.constant 0 : index
    %50 = vector.load %arg5[%c0_28, %c3, %c0_29] : memref<2x8x64xf32, #tpu.memory_space<vmem>>, vector<1x1x64xf32>
    %51 = vector.shape_cast %50 : vector<1x1x64xf32> to vector<1x64xf32>
    %c0_30 = arith.constant 0 : index
    %c4 = arith.constant 4 : index
    %c0_31 = arith.constant 0 : index
    %52 = vector.load %arg5[%c0_30, %c4, %c0_31] : memref<2x8x64xf32, #tpu.memory_space<vmem>>, vector<1x1x32xf32>
    %53 = vector.shape_cast %52 : vector<1x1x32xf32> to vector<1x32xf32>
    %c0_32 = arith.constant 0 : index
    %c5 = arith.constant 5 : index
    %c0_33 = arith.constant 0 : index
    %54 = vector.load %arg5[%c0_32, %c5, %c0_33] : memref<2x8x64xf32, #tpu.memory_space<vmem>>, vector<1x1x32xf32>
    %55 = vector.shape_cast %54 : vector<1x1x32xf32> to vector<1x32xf32>
    %c0_34 = arith.constant 0 : index
    %c6 = arith.constant 6 : index
    %c0_35 = arith.constant 0 : index
    %56 = vector.load %arg5[%c0_34, %c6, %c0_35] : memref<2x8x64xf32, #tpu.memory_space<vmem>>, vector<1x1x32xf32>
    %57 = vector.shape_cast %56 : vector<1x1x32xf32> to vector<1x32xf32>
    %58 = arith.truncf %42 : vector<16x32xf32> to vector<16x32xbf16>
    %cst_36 = arith.constant 0.000000e+00 : f32
    %59 = vector.broadcast %cst_36 : f32 to vector<16x32xf32>
    %c0_37 = arith.constant 0 : index
    %c0_38 = arith.constant 0 : index
    %c0_39 = arith.constant 0 : index
    %c0_40 = arith.constant 0 : index
    %60 = vector.load %arg0[%c0_37, %c0_38, %c0_39, %c0_40] : memref<2x6x32x16xbf16, #tpu.memory_space<vmem>>, vector<1x1x32x16xbf16>
    %61 = vector.shape_cast %60 : vector<1x1x32x16xbf16> to vector<32x16xbf16>
    %cst_41 = arith.constant dense<0.000000e+00> : vector<16x16xf32>
    %62 = tpu.matmul %58, %61, %cst_41 {dimension_numbers = #tpu.dot_dimension_numbers<[1], [0], [0], [1], [0, 0, 1, 1], [], []>} : vector<16x32xbf16>, vector<32x16xbf16>, vector<16x16xf32> -> vector<16x16xf32>
    %c0_42 = arith.constant 0 : index
    %c0_43 = arith.constant 0 : index
    %c0_44 = arith.constant 0 : index
    %c0_45 = arith.constant 0 : index
    %63 = vector.load %arg1[%c0_42, %c0_43, %c0_44, %c0_45] : memref<2x6x1x16xf32, #tpu.memory_space<vmem>>, vector<1x1x1x16xf32>
    %64 = vector.shape_cast %63 : vector<1x1x1x16xf32> to vector<1x16xf32>
    %65 = vector.broadcast %64 : vector<1x16xf32> to vector<16x16xf32>
    %66 = arith.addf %62, %65 : vector<16x16xf32>
    %c0_46 = arith.constant 0 : index
    %c1_47 = arith.constant 1 : index
    %c0_48 = arith.constant 0 : index
    %c0_49 = arith.constant 0 : index
    %67 = vector.load %arg0[%c0_46, %c1_47, %c0_48, %c0_49] : memref<2x6x32x16xbf16, #tpu.memory_space<vmem>>, vector<1x1x32x16xbf16>
    %68 = vector.shape_cast %67 : vector<1x1x32x16xbf16> to vector<32x16xbf16>
    %cst_50 = arith.constant dense<0.000000e+00> : vector<16x16xf32>
    %69 = tpu.matmul %58, %68, %cst_50 {dimension_numbers = #tpu.dot_dimension_numbers<[1], [0], [0], [1], [0, 0, 1, 1], [], []>} : vector<16x32xbf16>, vector<32x16xbf16>, vector<16x16xf32> -> vector<16x16xf32>
    %c0_51 = arith.constant 0 : index
    %c1_52 = arith.constant 1 : index
    %c0_53 = arith.constant 0 : index
    %c0_54 = arith.constant 0 : index
    %70 = vector.load %arg1[%c0_51, %c1_52, %c0_53, %c0_54] : memref<2x6x1x16xf32, #tpu.memory_space<vmem>>, vector<1x1x1x16xf32>
    %71 = vector.shape_cast %70 : vector<1x1x1x16xf32> to vector<1x16xf32>
    %72 = vector.broadcast %71 : vector<1x16xf32> to vector<16x16xf32>
    %73 = arith.addf %69, %72 : vector<16x16xf32>
    %c0_55 = arith.constant 0 : index
    %c2_56 = arith.constant 2 : index
    %c0_57 = arith.constant 0 : index
    %c0_58 = arith.constant 0 : index
    %74 = vector.load %arg0[%c0_55, %c2_56, %c0_57, %c0_58] : memref<2x6x32x16xbf16, #tpu.memory_space<vmem>>, vector<1x1x32x16xbf16>
    %75 = vector.shape_cast %74 : vector<1x1x32x16xbf16> to vector<32x16xbf16>
    %cst_59 = arith.constant dense<0.000000e+00> : vector<16x16xf32>
    %76 = tpu.matmul %58, %75, %cst_59 {dimension_numbers = #tpu.dot_dimension_numbers<[1], [0], [0], [1], [0, 0, 1, 1], [], []>} : vector<16x32xbf16>, vector<32x16xbf16>, vector<16x16xf32> -> vector<16x16xf32>
    %c0_60 = arith.constant 0 : index
    %c2_61 = arith.constant 2 : index
    %c0_62 = arith.constant 0 : index
    %c0_63 = arith.constant 0 : index
    %77 = vector.load %arg1[%c0_60, %c2_61, %c0_62, %c0_63] : memref<2x6x1x16xf32, #tpu.memory_space<vmem>>, vector<1x1x1x16xf32>
    %78 = vector.shape_cast %77 : vector<1x1x1x16xf32> to vector<1x16xf32>
    %79 = vector.broadcast %78 : vector<1x16xf32> to vector<16x16xf32>
    %80 = arith.addf %76, %79 : vector<16x16xf32>
    %81 = arith.truncf %66 : vector<16x16xf32> to vector<16x16xbf16>
    %82 = arith.truncf %73 : vector<16x16xf32> to vector<16x16xbf16>
    %cst_64 = arith.constant dense<0.000000e+00> : vector<16x16xf32>
    %83 = tpu.matmul %81, %82, %cst_64 {dimension_numbers = #tpu.dot_dimension_numbers<[1], [1], [0], [0], [0, 0, 1, 0], [], []>} : vector<16x16xbf16>, vector<16x16xbf16>, vector<16x16xf32> -> vector<16x16xf32>
    %cst_65 = arith.constant 2.500000e-01 : f32
    %84 = vector.broadcast %cst_65 : f32 to vector<16x16xf32>
    %85 = arith.mulf %83, %84 : vector<16x16xf32>
    %86 = arith.addf %85, %43 : vector<16x16xf32>
    %cst_66 = arith.constant dense<0xFF800000> : vector<16xf32>
    %87 = vector.multi_reduction <maximumf>, %86, %cst_66 [1] : vector<16x16xf32> to vector<16xf32>
    %88 = vector.shape_cast %87 : vector<16xf32> to vector<16x1xf32>
    %89 = vector.broadcast %88 : vector<16x1xf32> to vector<16x16xf32>
    %90 = arith.subf %86, %89 : vector<16x16xf32>
    %91 = math.exp %90 : vector<16x16xf32>
    %cst_67 = arith.constant dense<0.000000e+00> : vector<16xf32>
    %92 = vector.multi_reduction <add>, %91, %cst_67 [1] : vector<16x16xf32> to vector<16xf32>
    %93 = vector.shape_cast %92 : vector<16xf32> to vector<16x1xf32>
    %94 = vector.broadcast %93 : vector<16x1xf32> to vector<16x16xf32>
    %95 = arith.divf %91, %94 : vector<16x16xf32>
    %96 = arith.truncf %95 : vector<16x16xf32> to vector<16x16xbf16>
    %97 = arith.truncf %80 : vector<16x16xf32> to vector<16x16xbf16>
    %cst_68 = arith.constant dense<0.000000e+00> : vector<16x16xf32>
    %98 = tpu.matmul %96, %97, %cst_68 {dimension_numbers = #tpu.dot_dimension_numbers<[1], [0], [0], [1], [0, 0, 1, 1], [], []>} : vector<16x16xbf16>, vector<16x16xbf16>, vector<16x16xf32> -> vector<16x16xf32>
    %99 = arith.truncf %98 : vector<16x16xf32> to vector<16x16xbf16>
    %c0_69 = arith.constant 0 : index
    %c0_70 = arith.constant 0 : index
    %c0_71 = arith.constant 0 : index
    %c0_72 = arith.constant 0 : index
    %100 = vector.load %arg2[%c0_69, %c0_70, %c0_71, %c0_72] : memref<2x2x16x32xbf16, #tpu.memory_space<vmem>>, vector<1x1x16x32xbf16>
    %101 = vector.shape_cast %100 : vector<1x1x16x32xbf16> to vector<16x32xbf16>
    %cst_73 = arith.constant dense<0.000000e+00> : vector<16x32xf32>
    %102 = tpu.matmul %99, %101, %cst_73 {dimension_numbers = #tpu.dot_dimension_numbers<[1], [0], [0], [1], [0, 0, 1, 1], [], []>} : vector<16x16xbf16>, vector<16x32xbf16>, vector<16x32xf32> -> vector<16x32xf32>
    %103 = arith.addf %59, %102 : vector<16x32xf32>
    %c0_74 = arith.constant 0 : index
    %c3_75 = arith.constant 3 : index
    %c0_76 = arith.constant 0 : index
    %c0_77 = arith.constant 0 : index
    %104 = vector.load %arg0[%c0_74, %c3_75, %c0_76, %c0_77] : memref<2x6x32x16xbf16, #tpu.memory_space<vmem>>, vector<1x1x32x16xbf16>
    %105 = vector.shape_cast %104 : vector<1x1x32x16xbf16> to vector<32x16xbf16>
    %cst_78 = arith.constant dense<0.000000e+00> : vector<16x16xf32>
    %106 = tpu.matmul %58, %105, %cst_78 {dimension_numbers = #tpu.dot_dimension_numbers<[1], [0], [0], [1], [0, 0, 1, 1], [], []>} : vector<16x32xbf16>, vector<32x16xbf16>, vector<16x16xf32> -> vector<16x16xf32>
    %c0_79 = arith.constant 0 : index
    %c3_80 = arith.constant 3 : index
    %c0_81 = arith.constant 0 : index
    %c0_82 = arith.constant 0 : index
    %107 = vector.load %arg1[%c0_79, %c3_80, %c0_81, %c0_82] : memref<2x6x1x16xf32, #tpu.memory_space<vmem>>, vector<1x1x1x16xf32>
    %108 = vector.shape_cast %107 : vector<1x1x1x16xf32> to vector<1x16xf32>
    %109 = vector.broadcast %108 : vector<1x16xf32> to vector<16x16xf32>
    %110 = arith.addf %106, %109 : vector<16x16xf32>
    %c0_83 = arith.constant 0 : index
    %c4_84 = arith.constant 4 : index
    %c0_85 = arith.constant 0 : index
    %c0_86 = arith.constant 0 : index
    %111 = vector.load %arg0[%c0_83, %c4_84, %c0_85, %c0_86] : memref<2x6x32x16xbf16, #tpu.memory_space<vmem>>, vector<1x1x32x16xbf16>
    %112 = vector.shape_cast %111 : vector<1x1x32x16xbf16> to vector<32x16xbf16>
    %cst_87 = arith.constant dense<0.000000e+00> : vector<16x16xf32>
    %113 = tpu.matmul %58, %112, %cst_87 {dimension_numbers = #tpu.dot_dimension_numbers<[1], [0], [0], [1], [0, 0, 1, 1], [], []>} : vector<16x32xbf16>, vector<32x16xbf16>, vector<16x16xf32> -> vector<16x16xf32>
    %c0_88 = arith.constant 0 : index
    %c4_89 = arith.constant 4 : index
    %c0_90 = arith.constant 0 : index
    %c0_91 = arith.constant 0 : index
    %114 = vector.load %arg1[%c0_88, %c4_89, %c0_90, %c0_91] : memref<2x6x1x16xf32, #tpu.memory_space<vmem>>, vector<1x1x1x16xf32>
    %115 = vector.shape_cast %114 : vector<1x1x1x16xf32> to vector<1x16xf32>
    %116 = vector.broadcast %115 : vector<1x16xf32> to vector<16x16xf32>
    %117 = arith.addf %113, %116 : vector<16x16xf32>
    %c0_92 = arith.constant 0 : index
    %c5_93 = arith.constant 5 : index
    %c0_94 = arith.constant 0 : index
    %c0_95 = arith.constant 0 : index
    %118 = vector.load %arg0[%c0_92, %c5_93, %c0_94, %c0_95] : memref<2x6x32x16xbf16, #tpu.memory_space<vmem>>, vector<1x1x32x16xbf16>
    %119 = vector.shape_cast %118 : vector<1x1x32x16xbf16> to vector<32x16xbf16>
    %cst_96 = arith.constant dense<0.000000e+00> : vector<16x16xf32>
    %120 = tpu.matmul %58, %119, %cst_96 {dimension_numbers = #tpu.dot_dimension_numbers<[1], [0], [0], [1], [0, 0, 1, 1], [], []>} : vector<16x32xbf16>, vector<32x16xbf16>, vector<16x16xf32> -> vector<16x16xf32>
    %c0_97 = arith.constant 0 : index
    %c5_98 = arith.constant 5 : index
    %c0_99 = arith.constant 0 : index
    %c0_100 = arith.constant 0 : index
    %121 = vector.load %arg1[%c0_97, %c5_98, %c0_99, %c0_100] : memref<2x6x1x16xf32, #tpu.memory_space<vmem>>, vector<1x1x1x16xf32>
    %122 = vector.shape_cast %121 : vector<1x1x1x16xf32> to vector<1x16xf32>
    %123 = vector.broadcast %122 : vector<1x16xf32> to vector<16x16xf32>
    %124 = arith.addf %120, %123 : vector<16x16xf32>
    %125 = arith.truncf %110 : vector<16x16xf32> to vector<16x16xbf16>
    %126 = arith.truncf %117 : vector<16x16xf32> to vector<16x16xbf16>
    %cst_101 = arith.constant dense<0.000000e+00> : vector<16x16xf32>
    %127 = tpu.matmul %125, %126, %cst_101 {dimension_numbers = #tpu.dot_dimension_numbers<[1], [1], [0], [0], [0, 0, 1, 0], [], []>} : vector<16x16xbf16>, vector<16x16xbf16>, vector<16x16xf32> -> vector<16x16xf32>
    %cst_102 = arith.constant 2.500000e-01 : f32
    %128 = vector.broadcast %cst_102 : f32 to vector<16x16xf32>
    %129 = arith.mulf %127, %128 : vector<16x16xf32>
    %130 = arith.addf %129, %43 : vector<16x16xf32>
    %cst_103 = arith.constant dense<0xFF800000> : vector<16xf32>
    %131 = vector.multi_reduction <maximumf>, %130, %cst_103 [1] : vector<16x16xf32> to vector<16xf32>
    %132 = vector.shape_cast %131 : vector<16xf32> to vector<16x1xf32>
    %133 = vector.broadcast %132 : vector<16x1xf32> to vector<16x16xf32>
    %134 = arith.subf %130, %133 : vector<16x16xf32>
    %135 = math.exp %134 : vector<16x16xf32>
    %cst_104 = arith.constant dense<0.000000e+00> : vector<16xf32>
    %136 = vector.multi_reduction <add>, %135, %cst_104 [1] : vector<16x16xf32> to vector<16xf32>
    %137 = vector.shape_cast %136 : vector<16xf32> to vector<16x1xf32>
    %138 = vector.broadcast %137 : vector<16x1xf32> to vector<16x16xf32>
    %139 = arith.divf %135, %138 : vector<16x16xf32>
    %140 = arith.truncf %139 : vector<16x16xf32> to vector<16x16xbf16>
    %141 = arith.truncf %124 : vector<16x16xf32> to vector<16x16xbf16>
    %cst_105 = arith.constant dense<0.000000e+00> : vector<16x16xf32>
    %142 = tpu.matmul %140, %141, %cst_105 {dimension_numbers = #tpu.dot_dimension_numbers<[1], [0], [0], [1], [0, 0, 1, 1], [], []>} : vector<16x16xbf16>, vector<16x16xbf16>, vector<16x16xf32> -> vector<16x16xf32>
    %143 = arith.truncf %142 : vector<16x16xf32> to vector<16x16xbf16>
    %c0_106 = arith.constant 0 : index
    %c1_107 = arith.constant 1 : index
    %c0_108 = arith.constant 0 : index
    %c0_109 = arith.constant 0 : index
    %144 = vector.load %arg2[%c0_106, %c1_107, %c0_108, %c0_109] : memref<2x2x16x32xbf16, #tpu.memory_space<vmem>>, vector<1x1x16x32xbf16>
    %145 = vector.shape_cast %144 : vector<1x1x16x32xbf16> to vector<16x32xbf16>
    %cst_110 = arith.constant dense<0.000000e+00> : vector<16x32xf32>
    %146 = tpu.matmul %143, %145, %cst_110 {dimension_numbers = #tpu.dot_dimension_numbers<[1], [0], [0], [1], [0, 0, 1, 1], [], []>} : vector<16x16xbf16>, vector<16x32xbf16>, vector<16x32xf32> -> vector<16x32xf32>
    %147 = arith.addf %103, %146 : vector<16x32xf32>
    %148 = vector.broadcast %45 : vector<1x32xf32> to vector<16x32xf32>
    %149 = arith.addf %147, %148 : vector<16x32xf32>
    %150 = arith.addf %149, %42 : vector<16x32xf32>
    %cst_111 = arith.constant dense<0.000000e+00> : vector<16xf32>
    %151 = vector.multi_reduction <add>, %150, %cst_111 [1] : vector<16x32xf32> to vector<16xf32>
    %152 = vector.shape_cast %151 : vector<16xf32> to vector<16x1xf32>
    %cst_112 = arith.constant 3.200000e+01 : f32
    %153 = vector.broadcast %cst_112 : f32 to vector<16x1xf32>
    %154 = arith.divf %152, %153 : vector<16x1xf32>
    %155 = vector.broadcast %154 : vector<16x1xf32> to vector<16x32xf32>
    %156 = arith.subf %150, %155 : vector<16x32xf32>
    %157 = arith.mulf %156, %156 : vector<16x32xf32>
    %cst_113 = arith.constant dense<0.000000e+00> : vector<16xf32>
    %158 = vector.multi_reduction <add>, %157, %cst_113 [1] : vector<16x32xf32> to vector<16xf32>
    %159 = vector.shape_cast %158 : vector<16xf32> to vector<16x1xf32>
    %cst_114 = arith.constant 3.200000e+01 : f32
    %160 = vector.broadcast %cst_114 : f32 to vector<16x1xf32>
    %161 = arith.divf %159, %160 : vector<16x1xf32>
    %162 = vector.broadcast %154 : vector<16x1xf32> to vector<16x32xf32>
    %163 = arith.subf %150, %162 : vector<16x32xf32>
    %cst_115 = arith.constant 9.99999996E-13 : f32
    %164 = vector.broadcast %cst_115 : f32 to vector<16x1xf32>
    %165 = arith.addf %161, %164 : vector<16x1xf32>
    %166 = math.rsqrt %165 : vector<16x1xf32>
    %167 = vector.broadcast %166 : vector<16x1xf32> to vector<16x32xf32>
    %168 = arith.mulf %163, %167 : vector<16x32xf32>
    %169 = vector.broadcast %47 : vector<1x32xf32> to vector<16x32xf32>
    %170 = arith.mulf %168, %169 : vector<16x32xf32>
    %171 = vector.broadcast %49 : vector<1x32xf32> to vector<16x32xf32>
    %172 = arith.addf %170, %171 : vector<16x32xf32>
    %173 = arith.truncf %172 : vector<16x32xf32> to vector<16x32xbf16>
    %c0_116 = arith.constant 0 : index
    %c0_117 = arith.constant 0 : index
    %c0_118 = arith.constant 0 : index
    %174 = vector.load %arg3[%c0_116, %c0_117, %c0_118] : memref<2x32x64xbf16, #tpu.memory_space<vmem>>, vector<1x32x64xbf16>
    %175 = vector.shape_cast %174 : vector<1x32x64xbf16> to vector<32x64xbf16>
    %cst_119 = arith.constant dense<0.000000e+00> : vector<16x64xf32>
    %176 = tpu.matmul %173, %175, %cst_119 {dimension_numbers = #tpu.dot_dimension_numbers<[1], [0], [0], [1], [0, 0, 1, 1], [], []>} : vector<16x32xbf16>, vector<32x64xbf16>, vector<16x64xf32> -> vector<16x64xf32>
    %177 = vector.broadcast %51 : vector<1x64xf32> to vector<16x64xf32>
    %178 = arith.addf %176, %177 : vector<16x64xf32>
    %cst_120 = arith.constant 5.000000e-01 : f32
    %179 = vector.broadcast %cst_120 : f32 to vector<16x64xf32>
    %180 = arith.mulf %179, %178 : vector<16x64xf32>
    %cst_121 = arith.constant 4.471500e-02 : f32
    %181 = vector.broadcast %cst_121 : f32 to vector<16x64xf32>
    %182 = arith.mulf %181, %178 : vector<16x64xf32>
    %183 = arith.mulf %182, %178 : vector<16x64xf32>
    %184 = arith.mulf %183, %178 : vector<16x64xf32>
    %185 = arith.addf %178, %184 : vector<16x64xf32>
    %cst_122 = arith.constant 0.797884583 : f32
    %186 = vector.broadcast %cst_122 : f32 to vector<16x64xf32>
    %187 = arith.mulf %186, %185 : vector<16x64xf32>
    %188 = math.tanh %187 : vector<16x64xf32>
    %cst_123 = arith.constant 1.000000e+00 : f32
    %189 = vector.broadcast %cst_123 : f32 to vector<16x64xf32>
    %190 = arith.addf %189, %188 : vector<16x64xf32>
    %191 = arith.mulf %180, %190 : vector<16x64xf32>
    %192 = arith.truncf %191 : vector<16x64xf32> to vector<16x64xbf16>
    %c0_124 = arith.constant 0 : index
    %c0_125 = arith.constant 0 : index
    %c0_126 = arith.constant 0 : index
    %193 = vector.load %arg4[%c0_124, %c0_125, %c0_126] : memref<2x64x32xbf16, #tpu.memory_space<vmem>>, vector<1x64x32xbf16>
    %194 = vector.shape_cast %193 : vector<1x64x32xbf16> to vector<64x32xbf16>
    %cst_127 = arith.constant dense<0.000000e+00> : vector<16x32xf32>
    %195 = tpu.matmul %192, %194, %cst_127 {dimension_numbers = #tpu.dot_dimension_numbers<[1], [0], [0], [1], [0, 0, 1, 1], [], []>} : vector<16x64xbf16>, vector<64x32xbf16>, vector<16x32xf32> -> vector<16x32xf32>
    %196 = vector.broadcast %53 : vector<1x32xf32> to vector<16x32xf32>
    %197 = arith.addf %195, %196 : vector<16x32xf32>
    %198 = arith.addf %197, %172 : vector<16x32xf32>
    %cst_128 = arith.constant dense<0.000000e+00> : vector<16xf32>
    %199 = vector.multi_reduction <add>, %198, %cst_128 [1] : vector<16x32xf32> to vector<16xf32>
    %200 = vector.shape_cast %199 : vector<16xf32> to vector<16x1xf32>
    %cst_129 = arith.constant 3.200000e+01 : f32
    %201 = vector.broadcast %cst_129 : f32 to vector<16x1xf32>
    %202 = arith.divf %200, %201 : vector<16x1xf32>
    %203 = vector.broadcast %202 : vector<16x1xf32> to vector<16x32xf32>
    %204 = arith.subf %198, %203 : vector<16x32xf32>
    %205 = arith.mulf %204, %204 : vector<16x32xf32>
    %cst_130 = arith.constant dense<0.000000e+00> : vector<16xf32>
    %206 = vector.multi_reduction <add>, %205, %cst_130 [1] : vector<16x32xf32> to vector<16xf32>
    %207 = vector.shape_cast %206 : vector<16xf32> to vector<16x1xf32>
    %cst_131 = arith.constant 3.200000e+01 : f32
    %208 = vector.broadcast %cst_131 : f32 to vector<16x1xf32>
    %209 = arith.divf %207, %208 : vector<16x1xf32>
    %210 = vector.broadcast %202 : vector<16x1xf32> to vector<16x32xf32>
    %211 = arith.subf %198, %210 : vector<16x32xf32>
    %cst_132 = arith.constant 9.99999996E-13 : f32
    %212 = vector.broadcast %cst_132 : f32 to vector<16x1xf32>
    %213 = arith.addf %209, %212 : vector<16x1xf32>
    %214 = math.rsqrt %213 : vector<16x1xf32>
    %215 = vector.broadcast %214 : vector<16x1xf32> to vector<16x32xf32>
    %216 = arith.mulf %211, %215 : vector<16x32xf32>
    %217 = vector.broadcast %55 : vector<1x32xf32> to vector<16x32xf32>
    %218 = arith.mulf %216, %217 : vector<16x32xf32>
    %219 = vector.broadcast %57 : vector<1x32xf32> to vector<16x32xf32>
    %220 = arith.addf %218, %219 : vector<16x32xf32>
    %c1_133 = arith.constant 1 : index
    %c0_134 = arith.constant 0 : index
    %c0_135 = arith.constant 0 : index
    %221 = vector.load %arg5[%c1_133, %c0_134, %c0_135] : memref<2x8x64xf32, #tpu.memory_space<vmem>>, vector<1x1x32xf32>
    %222 = vector.shape_cast %221 : vector<1x1x32xf32> to vector<1x32xf32>
    %c1_136 = arith.constant 1 : index
    %c1_137 = arith.constant 1 : index
    %c0_138 = arith.constant 0 : index
    %223 = vector.load %arg5[%c1_136, %c1_137, %c0_138] : memref<2x8x64xf32, #tpu.memory_space<vmem>>, vector<1x1x32xf32>
    %224 = vector.shape_cast %223 : vector<1x1x32xf32> to vector<1x32xf32>
    %c1_139 = arith.constant 1 : index
    %c2_140 = arith.constant 2 : index
    %c0_141 = arith.constant 0 : index
    %225 = vector.load %arg5[%c1_139, %c2_140, %c0_141] : memref<2x8x64xf32, #tpu.memory_space<vmem>>, vector<1x1x32xf32>
    %226 = vector.shape_cast %225 : vector<1x1x32xf32> to vector<1x32xf32>
    %c1_142 = arith.constant 1 : index
    %c3_143 = arith.constant 3 : index
    %c0_144 = arith.constant 0 : index
    %227 = vector.load %arg5[%c1_142, %c3_143, %c0_144] : memref<2x8x64xf32, #tpu.memory_space<vmem>>, vector<1x1x64xf32>
    %228 = vector.shape_cast %227 : vector<1x1x64xf32> to vector<1x64xf32>
    %c1_145 = arith.constant 1 : index
    %c4_146 = arith.constant 4 : index
    %c0_147 = arith.constant 0 : index
    %229 = vector.load %arg5[%c1_145, %c4_146, %c0_147] : memref<2x8x64xf32, #tpu.memory_space<vmem>>, vector<1x1x32xf32>
    %230 = vector.shape_cast %229 : vector<1x1x32xf32> to vector<1x32xf32>
    %c1_148 = arith.constant 1 : index
    %c5_149 = arith.constant 5 : index
    %c0_150 = arith.constant 0 : index
    %231 = vector.load %arg5[%c1_148, %c5_149, %c0_150] : memref<2x8x64xf32, #tpu.memory_space<vmem>>, vector<1x1x32xf32>
    %232 = vector.shape_cast %231 : vector<1x1x32xf32> to vector<1x32xf32>
    %c1_151 = arith.constant 1 : index
    %c6_152 = arith.constant 6 : index
    %c0_153 = arith.constant 0 : index
    %233 = vector.load %arg5[%c1_151, %c6_152, %c0_153] : memref<2x8x64xf32, #tpu.memory_space<vmem>>, vector<1x1x32xf32>
    %234 = vector.shape_cast %233 : vector<1x1x32xf32> to vector<1x32xf32>
    %235 = arith.truncf %220 : vector<16x32xf32> to vector<16x32xbf16>
    %cst_154 = arith.constant 0.000000e+00 : f32
    %236 = vector.broadcast %cst_154 : f32 to vector<16x32xf32>
    %c1_155 = arith.constant 1 : index
    %c0_156 = arith.constant 0 : index
    %c0_157 = arith.constant 0 : index
    %c0_158 = arith.constant 0 : index
    %237 = vector.load %arg0[%c1_155, %c0_156, %c0_157, %c0_158] : memref<2x6x32x16xbf16, #tpu.memory_space<vmem>>, vector<1x1x32x16xbf16>
    %238 = vector.shape_cast %237 : vector<1x1x32x16xbf16> to vector<32x16xbf16>
    %cst_159 = arith.constant dense<0.000000e+00> : vector<16x16xf32>
    %239 = tpu.matmul %235, %238, %cst_159 {dimension_numbers = #tpu.dot_dimension_numbers<[1], [0], [0], [1], [0, 0, 1, 1], [], []>} : vector<16x32xbf16>, vector<32x16xbf16>, vector<16x16xf32> -> vector<16x16xf32>
    %c1_160 = arith.constant 1 : index
    %c0_161 = arith.constant 0 : index
    %c0_162 = arith.constant 0 : index
    %c0_163 = arith.constant 0 : index
    %240 = vector.load %arg1[%c1_160, %c0_161, %c0_162, %c0_163] : memref<2x6x1x16xf32, #tpu.memory_space<vmem>>, vector<1x1x1x16xf32>
    %241 = vector.shape_cast %240 : vector<1x1x1x16xf32> to vector<1x16xf32>
    %242 = vector.broadcast %241 : vector<1x16xf32> to vector<16x16xf32>
    %243 = arith.addf %239, %242 : vector<16x16xf32>
    %c1_164 = arith.constant 1 : index
    %c1_165 = arith.constant 1 : index
    %c0_166 = arith.constant 0 : index
    %c0_167 = arith.constant 0 : index
    %244 = vector.load %arg0[%c1_164, %c1_165, %c0_166, %c0_167] : memref<2x6x32x16xbf16, #tpu.memory_space<vmem>>, vector<1x1x32x16xbf16>
    %245 = vector.shape_cast %244 : vector<1x1x32x16xbf16> to vector<32x16xbf16>
    %cst_168 = arith.constant dense<0.000000e+00> : vector<16x16xf32>
    %246 = tpu.matmul %235, %245, %cst_168 {dimension_numbers = #tpu.dot_dimension_numbers<[1], [0], [0], [1], [0, 0, 1, 1], [], []>} : vector<16x32xbf16>, vector<32x16xbf16>, vector<16x16xf32> -> vector<16x16xf32>
    %c1_169 = arith.constant 1 : index
    %c1_170 = arith.constant 1 : index
    %c0_171 = arith.constant 0 : index
    %c0_172 = arith.constant 0 : index
    %247 = vector.load %arg1[%c1_169, %c1_170, %c0_171, %c0_172] : memref<2x6x1x16xf32, #tpu.memory_space<vmem>>, vector<1x1x1x16xf32>
    %248 = vector.shape_cast %247 : vector<1x1x1x16xf32> to vector<1x16xf32>
    %249 = vector.broadcast %248 : vector<1x16xf32> to vector<16x16xf32>
    %250 = arith.addf %246, %249 : vector<16x16xf32>
    %c1_173 = arith.constant 1 : index
    %c2_174 = arith.constant 2 : index
    %c0_175 = arith.constant 0 : index
    %c0_176 = arith.constant 0 : index
    %251 = vector.load %arg0[%c1_173, %c2_174, %c0_175, %c0_176] : memref<2x6x32x16xbf16, #tpu.memory_space<vmem>>, vector<1x1x32x16xbf16>
    %252 = vector.shape_cast %251 : vector<1x1x32x16xbf16> to vector<32x16xbf16>
    %cst_177 = arith.constant dense<0.000000e+00> : vector<16x16xf32>
    %253 = tpu.matmul %235, %252, %cst_177 {dimension_numbers = #tpu.dot_dimension_numbers<[1], [0], [0], [1], [0, 0, 1, 1], [], []>} : vector<16x32xbf16>, vector<32x16xbf16>, vector<16x16xf32> -> vector<16x16xf32>
    %c1_178 = arith.constant 1 : index
    %c2_179 = arith.constant 2 : index
    %c0_180 = arith.constant 0 : index
    %c0_181 = arith.constant 0 : index
    %254 = vector.load %arg1[%c1_178, %c2_179, %c0_180, %c0_181] : memref<2x6x1x16xf32, #tpu.memory_space<vmem>>, vector<1x1x1x16xf32>
    %255 = vector.shape_cast %254 : vector<1x1x1x16xf32> to vector<1x16xf32>
    %256 = vector.broadcast %255 : vector<1x16xf32> to vector<16x16xf32>
    %257 = arith.addf %253, %256 : vector<16x16xf32>
    %258 = arith.truncf %243 : vector<16x16xf32> to vector<16x16xbf16>
    %259 = arith.truncf %250 : vector<16x16xf32> to vector<16x16xbf16>
    %cst_182 = arith.constant dense<0.000000e+00> : vector<16x16xf32>
    %260 = tpu.matmul %258, %259, %cst_182 {dimension_numbers = #tpu.dot_dimension_numbers<[1], [1], [0], [0], [0, 0, 1, 0], [], []>} : vector<16x16xbf16>, vector<16x16xbf16>, vector<16x16xf32> -> vector<16x16xf32>
    %cst_183 = arith.constant 2.500000e-01 : f32
    %261 = vector.broadcast %cst_183 : f32 to vector<16x16xf32>
    %262 = arith.mulf %260, %261 : vector<16x16xf32>
    %263 = arith.addf %262, %43 : vector<16x16xf32>
    %cst_184 = arith.constant dense<0xFF800000> : vector<16xf32>
    %264 = vector.multi_reduction <maximumf>, %263, %cst_184 [1] : vector<16x16xf32> to vector<16xf32>
    %265 = vector.shape_cast %264 : vector<16xf32> to vector<16x1xf32>
    %266 = vector.broadcast %265 : vector<16x1xf32> to vector<16x16xf32>
    %267 = arith.subf %263, %266 : vector<16x16xf32>
    %268 = math.exp %267 : vector<16x16xf32>
    %cst_185 = arith.constant dense<0.000000e+00> : vector<16xf32>
    %269 = vector.multi_reduction <add>, %268, %cst_185 [1] : vector<16x16xf32> to vector<16xf32>
    %270 = vector.shape_cast %269 : vector<16xf32> to vector<16x1xf32>
    %271 = vector.broadcast %270 : vector<16x1xf32> to vector<16x16xf32>
    %272 = arith.divf %268, %271 : vector<16x16xf32>
    %273 = arith.truncf %272 : vector<16x16xf32> to vector<16x16xbf16>
    %274 = arith.truncf %257 : vector<16x16xf32> to vector<16x16xbf16>
    %cst_186 = arith.constant dense<0.000000e+00> : vector<16x16xf32>
    %275 = tpu.matmul %273, %274, %cst_186 {dimension_numbers = #tpu.dot_dimension_numbers<[1], [0], [0], [1], [0, 0, 1, 1], [], []>} : vector<16x16xbf16>, vector<16x16xbf16>, vector<16x16xf32> -> vector<16x16xf32>
    %276 = arith.truncf %275 : vector<16x16xf32> to vector<16x16xbf16>
    %c1_187 = arith.constant 1 : index
    %c0_188 = arith.constant 0 : index
    %c0_189 = arith.constant 0 : index
    %c0_190 = arith.constant 0 : index
    %277 = vector.load %arg2[%c1_187, %c0_188, %c0_189, %c0_190] : memref<2x2x16x32xbf16, #tpu.memory_space<vmem>>, vector<1x1x16x32xbf16>
    %278 = vector.shape_cast %277 : vector<1x1x16x32xbf16> to vector<16x32xbf16>
    %cst_191 = arith.constant dense<0.000000e+00> : vector<16x32xf32>
    %279 = tpu.matmul %276, %278, %cst_191 {dimension_numbers = #tpu.dot_dimension_numbers<[1], [0], [0], [1], [0, 0, 1, 1], [], []>} : vector<16x16xbf16>, vector<16x32xbf16>, vector<16x32xf32> -> vector<16x32xf32>
    %280 = arith.addf %236, %279 : vector<16x32xf32>
    %c1_192 = arith.constant 1 : index
    %c3_193 = arith.constant 3 : index
    %c0_194 = arith.constant 0 : index
    %c0_195 = arith.constant 0 : index
    %281 = vector.load %arg0[%c1_192, %c3_193, %c0_194, %c0_195] : memref<2x6x32x16xbf16, #tpu.memory_space<vmem>>, vector<1x1x32x16xbf16>
    %282 = vector.shape_cast %281 : vector<1x1x32x16xbf16> to vector<32x16xbf16>
    %cst_196 = arith.constant dense<0.000000e+00> : vector<16x16xf32>
    %283 = tpu.matmul %235, %282, %cst_196 {dimension_numbers = #tpu.dot_dimension_numbers<[1], [0], [0], [1], [0, 0, 1, 1], [], []>} : vector<16x32xbf16>, vector<32x16xbf16>, vector<16x16xf32> -> vector<16x16xf32>
    %c1_197 = arith.constant 1 : index
    %c3_198 = arith.constant 3 : index
    %c0_199 = arith.constant 0 : index
    %c0_200 = arith.constant 0 : index
    %284 = vector.load %arg1[%c1_197, %c3_198, %c0_199, %c0_200] : memref<2x6x1x16xf32, #tpu.memory_space<vmem>>, vector<1x1x1x16xf32>
    %285 = vector.shape_cast %284 : vector<1x1x1x16xf32> to vector<1x16xf32>
    %286 = vector.broadcast %285 : vector<1x16xf32> to vector<16x16xf32>
    %287 = arith.addf %283, %286 : vector<16x16xf32>
    %c1_201 = arith.constant 1 : index
    %c4_202 = arith.constant 4 : index
    %c0_203 = arith.constant 0 : index
    %c0_204 = arith.constant 0 : index
    %288 = vector.load %arg0[%c1_201, %c4_202, %c0_203, %c0_204] : memref<2x6x32x16xbf16, #tpu.memory_space<vmem>>, vector<1x1x32x16xbf16>
    %289 = vector.shape_cast %288 : vector<1x1x32x16xbf16> to vector<32x16xbf16>
    %cst_205 = arith.constant dense<0.000000e+00> : vector<16x16xf32>
    %290 = tpu.matmul %235, %289, %cst_205 {dimension_numbers = #tpu.dot_dimension_numbers<[1], [0], [0], [1], [0, 0, 1, 1], [], []>} : vector<16x32xbf16>, vector<32x16xbf16>, vector<16x16xf32> -> vector<16x16xf32>
    %c1_206 = arith.constant 1 : index
    %c4_207 = arith.constant 4 : index
    %c0_208 = arith.constant 0 : index
    %c0_209 = arith.constant 0 : index
    %291 = vector.load %arg1[%c1_206, %c4_207, %c0_208, %c0_209] : memref<2x6x1x16xf32, #tpu.memory_space<vmem>>, vector<1x1x1x16xf32>
    %292 = vector.shape_cast %291 : vector<1x1x1x16xf32> to vector<1x16xf32>
    %293 = vector.broadcast %292 : vector<1x16xf32> to vector<16x16xf32>
    %294 = arith.addf %290, %293 : vector<16x16xf32>
    %c1_210 = arith.constant 1 : index
    %c5_211 = arith.constant 5 : index
    %c0_212 = arith.constant 0 : index
    %c0_213 = arith.constant 0 : index
    %295 = vector.load %arg0[%c1_210, %c5_211, %c0_212, %c0_213] : memref<2x6x32x16xbf16, #tpu.memory_space<vmem>>, vector<1x1x32x16xbf16>
    %296 = vector.shape_cast %295 : vector<1x1x32x16xbf16> to vector<32x16xbf16>
    %cst_214 = arith.constant dense<0.000000e+00> : vector<16x16xf32>
    %297 = tpu.matmul %235, %296, %cst_214 {dimension_numbers = #tpu.dot_dimension_numbers<[1], [0], [0], [1], [0, 0, 1, 1], [], []>} : vector<16x32xbf16>, vector<32x16xbf16>, vector<16x16xf32> -> vector<16x16xf32>
    %c1_215 = arith.constant 1 : index
    %c5_216 = arith.constant 5 : index
    %c0_217 = arith.constant 0 : index
    %c0_218 = arith.constant 0 : index
    %298 = vector.load %arg1[%c1_215, %c5_216, %c0_217, %c0_218] : memref<2x6x1x16xf32, #tpu.memory_space<vmem>>, vector<1x1x1x16xf32>
    %299 = vector.shape_cast %298 : vector<1x1x1x16xf32> to vector<1x16xf32>
    %300 = vector.broadcast %299 : vector<1x16xf32> to vector<16x16xf32>
    %301 = arith.addf %297, %300 : vector<16x16xf32>
    %302 = arith.truncf %287 : vector<16x16xf32> to vector<16x16xbf16>
    %303 = arith.truncf %294 : vector<16x16xf32> to vector<16x16xbf16>
    %cst_219 = arith.constant dense<0.000000e+00> : vector<16x16xf32>
    %304 = tpu.matmul %302, %303, %cst_219 {dimension_numbers = #tpu.dot_dimension_numbers<[1], [1], [0], [0], [0, 0, 1, 0], [], []>} : vector<16x16xbf16>, vector<16x16xbf16>, vector<16x16xf32> -> vector<16x16xf32>
    %cst_220 = arith.constant 2.500000e-01 : f32
    %305 = vector.broadcast %cst_220 : f32 to vector<16x16xf32>
    %306 = arith.mulf %304, %305 : vector<16x16xf32>
    %307 = arith.addf %306, %43 : vector<16x16xf32>
    %cst_221 = arith.constant dense<0xFF800000> : vector<16xf32>
    %308 = vector.multi_reduction <maximumf>, %307, %cst_221 [1] : vector<16x16xf32> to vector<16xf32>
    %309 = vector.shape_cast %308 : vector<16xf32> to vector<16x1xf32>
    %310 = vector.broadcast %309 : vector<16x1xf32> to vector<16x16xf32>
    %311 = arith.subf %307, %310 : vector<16x16xf32>
    %312 = math.exp %311 : vector<16x16xf32>
    %cst_222 = arith.constant dense<0.000000e+00> : vector<16xf32>
    %313 = vector.multi_reduction <add>, %312, %cst_222 [1] : vector<16x16xf32> to vector<16xf32>
    %314 = vector.shape_cast %313 : vector<16xf32> to vector<16x1xf32>
    %315 = vector.broadcast %314 : vector<16x1xf32> to vector<16x16xf32>
    %316 = arith.divf %312, %315 : vector<16x16xf32>
    %317 = arith.truncf %316 : vector<16x16xf32> to vector<16x16xbf16>
    %318 = arith.truncf %301 : vector<16x16xf32> to vector<16x16xbf16>
    %cst_223 = arith.constant dense<0.000000e+00> : vector<16x16xf32>
    %319 = tpu.matmul %317, %318, %cst_223 {dimension_numbers = #tpu.dot_dimension_numbers<[1], [0], [0], [1], [0, 0, 1, 1], [], []>} : vector<16x16xbf16>, vector<16x16xbf16>, vector<16x16xf32> -> vector<16x16xf32>
    %320 = arith.truncf %319 : vector<16x16xf32> to vector<16x16xbf16>
    %c1_224 = arith.constant 1 : index
    %c1_225 = arith.constant 1 : index
    %c0_226 = arith.constant 0 : index
    %c0_227 = arith.constant 0 : index
    %321 = vector.load %arg2[%c1_224, %c1_225, %c0_226, %c0_227] : memref<2x2x16x32xbf16, #tpu.memory_space<vmem>>, vector<1x1x16x32xbf16>
    %322 = vector.shape_cast %321 : vector<1x1x16x32xbf16> to vector<16x32xbf16>
    %cst_228 = arith.constant dense<0.000000e+00> : vector<16x32xf32>
    %323 = tpu.matmul %320, %322, %cst_228 {dimension_numbers = #tpu.dot_dimension_numbers<[1], [0], [0], [1], [0, 0, 1, 1], [], []>} : vector<16x16xbf16>, vector<16x32xbf16>, vector<16x32xf32> -> vector<16x32xf32>
    %324 = arith.addf %280, %323 : vector<16x32xf32>
    %325 = vector.broadcast %222 : vector<1x32xf32> to vector<16x32xf32>
    %326 = arith.addf %324, %325 : vector<16x32xf32>
    %327 = arith.addf %326, %220 : vector<16x32xf32>
    %cst_229 = arith.constant dense<0.000000e+00> : vector<16xf32>
    %328 = vector.multi_reduction <add>, %327, %cst_229 [1] : vector<16x32xf32> to vector<16xf32>
    %329 = vector.shape_cast %328 : vector<16xf32> to vector<16x1xf32>
    %cst_230 = arith.constant 3.200000e+01 : f32
    %330 = vector.broadcast %cst_230 : f32 to vector<16x1xf32>
    %331 = arith.divf %329, %330 : vector<16x1xf32>
    %332 = vector.broadcast %331 : vector<16x1xf32> to vector<16x32xf32>
    %333 = arith.subf %327, %332 : vector<16x32xf32>
    %334 = arith.mulf %333, %333 : vector<16x32xf32>
    %cst_231 = arith.constant dense<0.000000e+00> : vector<16xf32>
    %335 = vector.multi_reduction <add>, %334, %cst_231 [1] : vector<16x32xf32> to vector<16xf32>
    %336 = vector.shape_cast %335 : vector<16xf32> to vector<16x1xf32>
    %cst_232 = arith.constant 3.200000e+01 : f32
    %337 = vector.broadcast %cst_232 : f32 to vector<16x1xf32>
    %338 = arith.divf %336, %337 : vector<16x1xf32>
    %339 = vector.broadcast %331 : vector<16x1xf32> to vector<16x32xf32>
    %340 = arith.subf %327, %339 : vector<16x32xf32>
    %cst_233 = arith.constant 9.99999996E-13 : f32
    %341 = vector.broadcast %cst_233 : f32 to vector<16x1xf32>
    %342 = arith.addf %338, %341 : vector<16x1xf32>
    %343 = math.rsqrt %342 : vector<16x1xf32>
    %344 = vector.broadcast %343 : vector<16x1xf32> to vector<16x32xf32>
    %345 = arith.mulf %340, %344 : vector<16x32xf32>
    %346 = vector.broadcast %224 : vector<1x32xf32> to vector<16x32xf32>
    %347 = arith.mulf %345, %346 : vector<16x32xf32>
    %348 = vector.broadcast %226 : vector<1x32xf32> to vector<16x32xf32>
    %349 = arith.addf %347, %348 : vector<16x32xf32>
    %350 = arith.truncf %349 : vector<16x32xf32> to vector<16x32xbf16>
    %c1_234 = arith.constant 1 : index
    %c0_235 = arith.constant 0 : index
    %c0_236 = arith.constant 0 : index
    %351 = vector.load %arg3[%c1_234, %c0_235, %c0_236] : memref<2x32x64xbf16, #tpu.memory_space<vmem>>, vector<1x32x64xbf16>
    %352 = vector.shape_cast %351 : vector<1x32x64xbf16> to vector<32x64xbf16>
    %cst_237 = arith.constant dense<0.000000e+00> : vector<16x64xf32>
    %353 = tpu.matmul %350, %352, %cst_237 {dimension_numbers = #tpu.dot_dimension_numbers<[1], [0], [0], [1], [0, 0, 1, 1], [], []>} : vector<16x32xbf16>, vector<32x64xbf16>, vector<16x64xf32> -> vector<16x64xf32>
    %354 = vector.broadcast %228 : vector<1x64xf32> to vector<16x64xf32>
    %355 = arith.addf %353, %354 : vector<16x64xf32>
    %cst_238 = arith.constant 5.000000e-01 : f32
    %356 = vector.broadcast %cst_238 : f32 to vector<16x64xf32>
    %357 = arith.mulf %356, %355 : vector<16x64xf32>
    %cst_239 = arith.constant 4.471500e-02 : f32
    %358 = vector.broadcast %cst_239 : f32 to vector<16x64xf32>
    %359 = arith.mulf %358, %355 : vector<16x64xf32>
    %360 = arith.mulf %359, %355 : vector<16x64xf32>
    %361 = arith.mulf %360, %355 : vector<16x64xf32>
    %362 = arith.addf %355, %361 : vector<16x64xf32>
    %cst_240 = arith.constant 0.797884583 : f32
    %363 = vector.broadcast %cst_240 : f32 to vector<16x64xf32>
    %364 = arith.mulf %363, %362 : vector<16x64xf32>
    %365 = math.tanh %364 : vector<16x64xf32>
    %cst_241 = arith.constant 1.000000e+00 : f32
    %366 = vector.broadcast %cst_241 : f32 to vector<16x64xf32>
    %367 = arith.addf %366, %365 : vector<16x64xf32>
    %368 = arith.mulf %357, %367 : vector<16x64xf32>
    %369 = arith.truncf %368 : vector<16x64xf32> to vector<16x64xbf16>
    %c1_242 = arith.constant 1 : index
    %c0_243 = arith.constant 0 : index
    %c0_244 = arith.constant 0 : index
    %370 = vector.load %arg4[%c1_242, %c0_243, %c0_244] : memref<2x64x32xbf16, #tpu.memory_space<vmem>>, vector<1x64x32xbf16>
    %371 = vector.shape_cast %370 : vector<1x64x32xbf16> to vector<64x32xbf16>
    %cst_245 = arith.constant dense<0.000000e+00> : vector<16x32xf32>
    %372 = tpu.matmul %369, %371, %cst_245 {dimension_numbers = #tpu.dot_dimension_numbers<[1], [0], [0], [1], [0, 0, 1, 1], [], []>} : vector<16x64xbf16>, vector<64x32xbf16>, vector<16x32xf32> -> vector<16x32xf32>
    %373 = vector.broadcast %230 : vector<1x32xf32> to vector<16x32xf32>
    %374 = arith.addf %372, %373 : vector<16x32xf32>
    %375 = arith.addf %374, %349 : vector<16x32xf32>
    %cst_246 = arith.constant dense<0.000000e+00> : vector<16xf32>
    %376 = vector.multi_reduction <add>, %375, %cst_246 [1] : vector<16x32xf32> to vector<16xf32>
    %377 = vector.shape_cast %376 : vector<16xf32> to vector<16x1xf32>
    %cst_247 = arith.constant 3.200000e+01 : f32
    %378 = vector.broadcast %cst_247 : f32 to vector<16x1xf32>
    %379 = arith.divf %377, %378 : vector<16x1xf32>
    %380 = vector.broadcast %379 : vector<16x1xf32> to vector<16x32xf32>
    %381 = arith.subf %375, %380 : vector<16x32xf32>
    %382 = arith.mulf %381, %381 : vector<16x32xf32>
    %cst_248 = arith.constant dense<0.000000e+00> : vector<16xf32>
    %383 = vector.multi_reduction <add>, %382, %cst_248 [1] : vector<16x32xf32> to vector<16xf32>
    %384 = vector.shape_cast %383 : vector<16xf32> to vector<16x1xf32>
    %cst_249 = arith.constant 3.200000e+01 : f32
    %385 = vector.broadcast %cst_249 : f32 to vector<16x1xf32>
    %386 = arith.divf %384, %385 : vector<16x1xf32>
    %387 = vector.broadcast %379 : vector<16x1xf32> to vector<16x32xf32>
    %388 = arith.subf %375, %387 : vector<16x32xf32>
    %cst_250 = arith.constant 9.99999996E-13 : f32
    %389 = vector.broadcast %cst_250 : f32 to vector<16x1xf32>
    %390 = arith.addf %386, %389 : vector<16x1xf32>
    %391 = math.rsqrt %390 : vector<16x1xf32>
    %392 = vector.broadcast %391 : vector<16x1xf32> to vector<16x32xf32>
    %393 = arith.mulf %388, %392 : vector<16x32xf32>
    %394 = vector.broadcast %232 : vector<1x32xf32> to vector<16x32xf32>
    %395 = arith.mulf %393, %394 : vector<16x32xf32>
    %396 = vector.broadcast %234 : vector<1x32xf32> to vector<16x32xf32>
    %397 = arith.addf %395, %396 : vector<16x32xf32>
    %398 = vector.shape_cast %397 : vector<16x32xf32> to vector<2x8x32xf32>
    %399 = vector.extract_strided_slice %398 {offsets = [0, 0, 0], sizes = [2, 1, 32], strides = [1, 1, 1]} : vector<2x8x32xf32> to vector<2x1x32xf32>
    %400 = vector.shape_cast %399 : vector<2x1x32xf32> to vector<2x32xf32>
    %401 = arith.truncf %400 : vector<2x32xf32> to vector<2x32xbf16>
    %c0_251 = arith.constant 0 : index
    %c0_252 = arith.constant 0 : index
    %402 = vector.load %arg14[%c0_251, %c0_252] : memref<32x32xbf16, #tpu.memory_space<vmem>>, vector<32x32xbf16>
    %cst_253 = arith.constant dense<0.000000e+00> : vector<2x32xf32>
    %403 = tpu.matmul %401, %402, %cst_253 {dimension_numbers = #tpu.dot_dimension_numbers<[1], [0], [0], [1], [0, 0, 1, 1], [], []>} : vector<2x32xbf16>, vector<32x32xbf16>, vector<2x32xf32> -> vector<2x32xf32>
    %c0_254 = arith.constant 0 : index
    %c0_255 = arith.constant 0 : index
    %404 = vector.load %arg15[%c0_254, %c0_255] : memref<1x32xf32, #tpu.memory_space<vmem>>, vector<1x32xf32>
    %405 = vector.broadcast %404 : vector<1x32xf32> to vector<2x32xf32>
    %406 = arith.addf %403, %405 : vector<2x32xf32>
    %407 = math.tanh %406 : vector<2x32xf32>
    %408 = arith.truncf %407 : vector<2x32xf32> to vector<2x32xbf16>
    %c0_256 = arith.constant 0 : index
    %c0_257 = arith.constant 0 : index
    %409 = vector.load %arg16[%c0_256, %c0_257] : memref<32x2xbf16, #tpu.memory_space<vmem>>, vector<32x2xbf16>
    %cst_258 = arith.constant dense<0.000000e+00> : vector<2x2xf32>
    %410 = tpu.matmul %408, %409, %cst_258 {dimension_numbers = #tpu.dot_dimension_numbers<[1], [0], [0], [1], [0, 0, 1, 1], [], []>} : vector<2x32xbf16>, vector<32x2xbf16>, vector<2x2xf32> -> vector<2x2xf32>
    %c0_259 = arith.constant 0 : index
    %c0_260 = arith.constant 0 : index
    %411 = vector.load %arg17[%c0_259, %c0_260] : memref<1x2xf32, #tpu.memory_space<vmem>>, vector<1x2xf32>
    %412 = vector.broadcast %411 : vector<1x2xf32> to vector<2x2xf32>
    %413 = arith.addf %410, %412 : vector<2x2xf32>
    %c0_261 = arith.constant 0 : index
    %c0_262 = arith.constant 0 : index
    %414 = vector.load %arg18[%c0_261, %c0_262] : memref<2x2xf32, #tpu.memory_space<vmem>>, vector<2x2xf32>
    tpu.vector_store %arg18[%c0_261, %c0_262], %413 {strides = array<i32>} : memref<2x2xf32, #tpu.memory_space<vmem>>, vector<2x2xf32>,
    return
  }
}

</mosaic_0001>

<bundles_post_ra>
// kernel: mul.58
= control target key start
LH: loop header
LB: loop body
LE: loop exit
PB: predicated region body
PF: predicated region fallthrough
CT: control target
= control target key end

     0   :  { %vm7_vm0 = vcmask 64512   ;;  %vm13_vm1 = vcmask 130112   ;;  %s39_s0 = inlined_call_operand.vmem [shape: f32[2,8], index: 0, kind: input, shape index: {}]   ;;  %s40_s1 = inlined_call_operand.vmem [shape: f32[16], index: 1, kind: output, shape index: {}]  }
   0x1   :  { %v4_v0 = vld [vmem:[%s39_s0] sm:$0x3]  ;;  %s22_s0 = smov 8  }
   0x2   :  { %5 = vst [vmem:[#allocation1] sm:$0x3] %v4_v0 }
   0x9   :  { %v10_v1 = vld [vmem:[#allocation1 + $0x1] sm:$0x1]   ;;  %v6_v2 = vld [vmem:[#allocation1] sm:$0x1]  }
   0xa   :  { %11 = vrot.lane.b32.xlu0 %v10_v1, %s22_s0  ;;  %8 = vst.msk [vmem:[#allocation0] sm:$0x1] %vm7_vm0, %v6_v2  }
  0x7c   :  { %v12_v3 = vpop.permute.xlu0 %11  }
  0x7d   :  { %14 = vst.msk [vmem:[#allocation0] sm:$0x1] %vm13_vm1, %v12_v3  }
  0x84   :  { %v18_v4 = vld [vmem:[#allocation0] sm:$0x1] }
  0x85   :  { %20 = vst [vmem:[%s40_s1] sm:$0x1] %v18_v4 }

// kernel: madlib_forward.1
= control target key start
LH: loop header
LB: loop body
LE: loop exit
PB: predicated region body
PF: predicated region fallthrough
CT: control target
= control target key end

     0   :  { %s3569_s0 = inlined_call_operand.vmem [shape: bf16[2,6,32,16], index: 0, kind: input, shape index: {}]   ;;  %s3570_s1 = inlined_call_operand.vmem [shape: f32[2,6,1,16], index: 1, kind: input, shape index: {}]   ;;  %s3571_s2 = inlined_call_operand.vmem [shape: bf16[2,2,16,32], index: 2, kind: input, shape index: {}]   ;;  %s3572_s3 = inlined_call_operand.vmem [shape: bf16[2,32,64], index: 3, kind: input, shape index: {}]   ;;  %s3573_s4 = inlined_call_operand.vmem [shape: bf16[2,64,32], index: 4, kind: input, shape index: {}]   ;;  %s3574_s5 = inlined_call_operand.vmem [shape: f32[2,8,64], index: 5, kind: input, shape index: {}]   ;;  %s3575_s6 = inlined_call_operand.vmem [shape: f32[16,32], index: 6, kind: input, shape index: {}]   ;;  %s3576_s7 = inlined_call_operand.vmem [shape: f32[16,32], index: 7, kind: input, shape index: {}]   ;;  %s3577_s8 = inlined_call_operand.vmem [shape: f32[1,32], index: 8, kind: input, shape index: {}]   ;;  %s3578_s9 = inlined_call_operand.vmem [shape: f32[16,32], index: 9, kind: input, shape index: {}]   ;;  %s3579_s10 = inlined_call_operand.vmem [shape: f32[16,1], index: 10, kind: input, shape index: {}]   ;;  %s3580_s11 = inlined_call_operand.vmem [shape: f32[1,32], index: 11, kind: input, shape index: {}]   ;;  %s3581_s12 = inlined_call_operand.vmem [shape: f32[1,32], index: 12, kind: input, shape index: {}]   ;;  %s3582_s13 = inlined_call_operand.vmem [shape: f32[16,16], index: 13, kind: input, shape index: {}]   ;;  %s3583_s14 = inlined_call_operand.vmem [shape: bf16[32,32], index: 14, kind: input, shape index: {}]   ;;  %s3584_s15 = inlined_call_operand.vmem [shape: f32[1,32], index: 15, kind: input, shape index: {}]   ;;  %s3585_s16 = inlined_call_operand.vmem [shape: bf16[32,2], index: 16, kind: input, shape index: {}]   ;;  %s3586_s17 = inlined_call_operand.vmem [shape: f32[1,2], index: 17, kind: input, shape index: {}]   ;;  %s3587_s18 = inlined_call_operand.hbm [shape: f32[2,2], index: 18, kind: output, shape index: {}]  }
   0x1   :  { %3591 = sst [smem:[#allocation5_spill]] %s3569_s0 }
   0x2   :  { %3592 = sst [smem:[#allocation6_spill]] %s3570_s1 }
   0x3   :  { %3593 = sst [smem:[#allocation7_spill]] %s3571_s2 }
   0x4   :  { %v61_v0 = vld [vmem:[%s3578_s9] sm:$0xff]  ;;  %vm65_vm0 = vcmask 261120   ;;  %v62_v1 = vld [vmem:[%s3578_s9 + $0x8] sm:$0xff]  ;;  %v2963_v5 = vmov 0  }
   0x5   :  { %v72_v2 = vld [vmem:[%s3579_s10] sm:$0xff]  ;;  %v63_v3 = vmul.f32 %v61_v0, %v61_v0  ;;  %v64_v4 = vmul.f32 %v62_v1, %v62_v1  ;;  %2827 = vset.pattern.permute.xlu1 %v2963_v5  ;;  %v73_v6 = vld [vmem:[%s3579_s10 + $0x8] sm:$0xff]  ;;  %2828 = vset.pattern.permute.xlu0 %v2963_v5 }
   0x6   :  { %76 = vperm.xlu1 %2827, %v72_v2  }
   0x7   :  { %v66_v7 = vsel %vm65_vm0, %v63_v3, 0.0  ;;  %v69_v8 = vsel %vm65_vm0, %v64_v4, 0.0 }
   0x8   :  { %67 = vadd.xlane.f32.xlu0 %v66_v7 }
   0xa   :  { %81 = vperm.xlu1 %2827, %v73_v6  }
   0xc   :  { %70 = vadd.xlane.f32.xlu0 %v69_v8 }
   0xd   :  { %23 = vsyncpa [#allocation3], 0  ;;  %v92_v16 = vld [vmem:[%s3575_s6] sm:$0xff]  ;;  %v93_v23 = vld [vmem:[%s3575_s6 + $0x8] sm:$0xff]  ;;  %v2964_v46 = vmov 0.0   ;;  %vm2965_vm1 = vmmov 0  }
   0xe   :  { %v96_v19 = vld [vmem:[%s3576_s7] sm:$0xff]  ;;  %v97_v27 = vld [vmem:[%s3576_s7 + $0x8] sm:$0xff]  ;;  %2599 = vmatprep.subr.bf16.mxu0 %v2964_v46  ;;  %2607 = vmatprep.subr.bf16.mxu1 %v2964_v46  ;;  %s3595_s25 = sld [smem:[#allocation6_spill]]  ;;  %vm365_vm2 = vcmask 130048   ;;  %s3596_s0 = sld [smem:[#allocation7_spill]]  ;;  %vm1077_vm3 = vcmask 523264  }
   0xf   :  { %v2332_v24 = vld [vmem:[%s3577_s8] ss:$0 sm:$0xff]  ;;  %s3594_s8 = sld [smem:[#allocation5_spill]]  ;;  %2603 = vmatprep.mubr.msk.bf16.mxu0 %vm2965_vm1, %v2964_v46  ;;  %2611 = vmatprep.mubr.msk.bf16.mxu1 %vm2965_vm1, %v2964_v46  ;;  %vm2190_vm4 = vcmask 1041409   ;;  %vm2316_vm5 = vcmask 9216  }
  0x10   :  { %v2333_v57 = vld [vmem:[%s3580_s11] ss:$0 sm:$0xff] }
  0x11   :  { %v2334_v61 = vld [vmem:[%s3581_s12] ss:$0 sm:$0xff] }
  0x14   :  { %v2335_v4 = vld [vmem:[%s3595_s25] ss:$0 sm:$0xff]  ;;  %v2344_v6 = vld [vmem:[%s3595_s25 + $0x1] ss:$0 sm:$0xff] }
  0x15   :  { %v2829_v44 = vld [vmem:[%s3594_s8] sm:$0xff]   ;;  %v2830_v45 = vld [vmem:[%s3594_s8 + $0x10] sm:$0xff]   ;;  %v2831_v47 = vld [vmem:[%s3594_s8 + $0x8] sm:$0xff]  }
  0x16   :  { %2600 = vmatpush3.bf16.msra.mxu0 %v2829_v44  ;;  %2608 = vmatpush3.bf16.msra.mxu1 %v2830_v45  ;;  %v2832_v48 = vld [vmem:[%s3594_s8 + $0x18] sm:$0xff]   ;;  %v2834_v3 = vld [vmem:[%s3594_s8 + $0x28] sm:$0xff]   ;;  %v2364_v44 = vld [vmem:[%s3595_s25 + $0x3] ss:$0 sm:$0xff] }
  0x17   :  { %2601 = vmatprep.subr.bf16.mxu0 %v2964_v46  ;;  %2609 = vmatprep.subr.bf16.mxu1 %v2964_v46 }
  0x1a   :  { %2602 = vmatpush3.bf16.msra.mxu0 %v2831_v47  ;;  %2610 = vmatpush3.bf16.msra.mxu1 %v2832_v48 }
  0x1b   :  { %2615 = vmatprep.subr.bf16.mxu0 %v2964_v46  ;;  %2623 = vmatprep.subr.bf16.mxu1 %v2964_v46 }
  0x85   :  { %v77_v13 = vpop.permute.xlu1 %76 }
  0x86   :  { %v84_v14 = vmul.f32 %v77_v13, %v61_v0 }
  0x89   :  { %v82_v17 = vpop.permute.xlu1 %81 }
  0x8a   :  { %v85_v21 = vmul.f32 %v82_v17, %v62_v1  ;;  %v2833_v1 = vld [vmem:[%s3594_s8 + $0x20] sm:$0xff]  }
  0x95   :  { %v68_v9 = vpop.xlane.xlu0 %67 }
  0x96   :  { %v86_v10 = vadd.f32 1e-12, %v68_v9 }
  0x98   :  { %2873 = vrsqrt.f32 %v86_v10 }
  0x99   :  { %v71_v11 = vpop.xlane.xlu0 %70 }
  0x9a   :  { %v87_v12 = vadd.f32 1e-12, %v71_v11 }
  0x9c   :  { %2875 = vrsqrt.f32 %v87_v12 }
  0xa2   :  { %v2874_v15 = vpop.eup %2873 }
  0xa3   :  { %v90_v18 = vmul.f32 %v2874_v15, %v84_v14 }
  0xa5   :  { %v94_v20 = vadd.f32 %v92_v16, %v90_v18 }
  0xa6   :  { %v2876_v22 = vpop.eup %2875 }
  0xa7   :  { %v91_v25 = vmul.f32 %v2876_v22, %v85_v21  ;;  %v98_v26 = vadd.f32 %v96_v19, %v94_v20  ;;  %v2353_v21 = vld [vmem:[%s3595_s25 + $0x2] ss:$0 sm:$0xff] }
  0xa9   :  { %v95_v28 = vadd.f32 %v93_v23, %v91_v25  ;;  %v107_v29 = vadd.f32 %v2332_v24, %v98_v26 }
  0xab   :  { %v111_v30 = vsel %vm65_vm0, %v107_v29, 0.0  ;;  %v99_v31 = vadd.f32 %v97_v27, %v95_v28  ;;  %v2835_v28 = vld [vmem:[%s3594_s8 + $0x30] sm:$0xff]  }
  0xac   :  { %112 = vadd.xlane.f32.xlu0 %v111_v30  ;;  %v2836_v30 = vld [vmem:[%s3594_s8 + $0x38] sm:$0xff]  }
  0xad   :  { %v108_v32 = vadd.f32 %v2332_v24, %v99_v31  ;;  %v2837_v31 = vld [vmem:[%s3594_s8 + $0x50] sm:$0xff]  }
  0xaf   :  { %v114_v33 = vsel %vm65_vm0, %v108_v32, 0.0 }
  0xb0   :  { %115 = vadd.xlane.f32.xlu1 %v114_v33 }
 0x139   :  { %v113_v34 = vpop.xlane.xlu0 %112 }
 0x13a   :  { %v118_v35 = vmul.f32 0.03125, %v113_v34  ;;  %v3193_v34 = vld [vmem:[%s3582_s13] sm:$0xff] }
 0x13c   :  { %v120_v36 = vsub.f32 %v107_v29, %v118_v35 }
 0x13d   :  { %v116_v37 = vpop.xlane.xlu1 %115 }
 0x13e   :  { %v119_v38 = vmul.f32 0.03125, %v116_v37  ;;  %v122_v39 = vmul.f32 %v120_v36, %v120_v36 }
 0x140   :  { %v121_v40 = vsub.f32 %v108_v32, %v119_v38  ;;  %v124_v41 = vsel %vm65_vm0, %v122_v39, 0.0  ;;  %v2838_v32 = vld [vmem:[%s3594_s8 + $0x58] sm:$0xff]   ;;  %v3198_v38 = vld [vmem:[%s3582_s13 + $0x8] sm:$0xff] }
 0x141   :  { %125 = vadd.xlane.f32.xlu0 %v124_v41 }
 0x142   :  { %v123_v42 = vmul.f32 %v121_v40, %v121_v40 }
 0x144   :  { %v127_v43 = vsel %vm65_vm0, %v123_v42, 0.0 }
 0x145   :  { %128 = vadd.xlane.f32.xlu0 %v127_v43 }
 0x1ce   :  { %v126_v49 = vpop.xlane.xlu0 %125 }
 0x1cf   :  { %v130_v50 = vmul.f32 0.03125, %v126_v49 }
 0x1d1   :  { %v132_v51 = vadd.f32 1e-12, %v130_v50 }
 0x1d2   :  { %v129_v52 = vpop.xlane.xlu0 %128 }
 0x1d3   :  { %2877 = vrsqrt.f32 %v132_v51  ;;  %v131_v53 = vmul.f32 0.03125, %v129_v52 }
 0x1d5   :  { %v133_v54 = vadd.f32 1e-12, %v131_v53 }
 0x1d7   :  { %2879 = vrsqrt.f32 %v133_v54  ;;  %v2382_v54 = vld [vmem:[%s3595_s25 + $0x5] ss:$0 sm:$0xff] }
 0x1dd   :  { %v2878_v55 = vpop.eup %2877 }
 0x1de   :  { %v136_v56 = vmul.f32 %v2878_v55, %v120_v36 }
 0x1e0   :  { %v144_v59 = vmul.f32 %v2333_v57, %v136_v56 }
 0x1e1   :  { %v2880_v58 = vpop.eup %2879 }
 0x1e2   :  { %v137_v60 = vmul.f32 %v2880_v58, %v121_v40  ;;  %v3123_v63 = vadd.f32 %v2334_v61, %v144_v59 }
 0x1e4   :  { %v145_v62 = vmul.f32 %v2333_v57, %v137_v60 }
 0x1e6   :  { %v3125_v0 = vadd.f32 %v2334_v61, %v145_v62 }
 0x1e8   :  { %v3132_v2 = vpack.c.bf16 %v3125_v0, %v3123_v63 }
 0x1ea   :  { %2604 = vmatmul.mubr.msk.bf16.vlgmr.msra.gmra.mrb[0].mxu0 %vm65_vm0, %v3132_v2  ;;  %2612 = vmatmul.mubr.msk.bf16.vlgmr.msra.gmra.mrb[0].mxu1 %vm65_vm0, %v3132_v2 }
 0x1eb   :  { %2616 = vmatpush3.bf16.msra.mxu0 %v2833_v1  ;;  %2619 = vmatprep.mubr.msk.bf16.mxu0 %vm2965_vm1, %v2964_v46 }
 0x1ec   :  { %2617 = vmatprep.subr.bf16.mxu0 %v2964_v46  ;;  %2625 = vmatprep.mubr.msk.bf16.mxu1 %vm2965_vm1, %v2964_v46 }
 0x1ef   :  { %2618 = vmatpush3.bf16.msra.mxu0 %v2834_v3 }
 0x1f0   :  { %2629 = vmatprep.subr.bf16.mxu0 %v2964_v46 }
 0x1f2   :  { %2620 = vmatmul.mubr.msk.bf16.vlgmr.msra.gmra.mrb[4].mxu0 %vm65_vm0, %v3132_v2 }
 0x1f3   :  { %2631 = vmatprep.mubr.msk.bf16.mxu0 %vm2965_vm1, %v2964_v46 }
 0x2bd   :  { %v224_v5 = vpop.f32.mrb[0].mxu0  ;;  %v290_v7 = vpop.f32.mrb[0].mxu1 }
 0x2be   :  { %v2605_v8 = vpop.f32.mrb[1].mxu0  ;;  %v2613_v9 = vpop.f32.mrb[1].mxu1  ;;  %v225_v12 = vadd.f32 %v2335_v4, %v224_v5  ;;  %v291_v13 = vadd.f32 %v2344_v6, %v290_v7 }
 0x2bf   :  { %v227_v10 = vpop.f32.mrb[2].mxu0  ;;  %v293_v11 = vpop.f32.mrb[2].mxu1 }
 0x2c0   :  { %v228_v14 = vadd.f32 %v2335_v4, %v227_v10  ;;  %v294_v15 = vadd.f32 %v2344_v6, %v293_v11  ;;  %v2606_v16 = vpop.f32.mrb[3].mxu0  ;;  %v2614_v17 = vpop.f32.mrb[3].mxu1 }
 0x2c1   :  { %v2839_v17 = vld [vmem:[%s3594_s8 + $0x40] sm:$0xff]  }
 0x2c2   :  { %v363_v18 = vpack.c.bf16 %v228_v14, %v225_v12  ;;  %v364_v19 = vpack.c.bf16 %v294_v15, %v291_v13 }
 0x2c4   :  { %v370_v20 = vsel %vm365_vm2, %v364_v19, 0  ;;  %v2840_v19 = vld [vmem:[%s3594_s8 + $0x48] sm:$0xff]  }
 0x2c5   :  { %v356_v22 = vpop.f32.mrb[4].mxu0  ;;  %2624 = vmatpush3.bf16.xpose.msra.mxu1 %v370_v20 }
 0x2c6   :  { %v2621_v23 = vpop.f32.mrb[5].mxu0  ;;  %2635 = vmatprep.subr.bf16.mxu1 %v2964_v46  ;;  %v357_v25 = vadd.f32 %v2353_v21, %v356_v22 }
 0x2c7   :  { %v359_v24 = vpop.f32.mrb[6].mxu0 }
 0x2c8   :  { %v360_v26 = vadd.f32 %v2353_v21, %v359_v24  ;;  %v2622_v27 = vpop.f32.mrb[7].mxu0 }
 0x2ca   :  { %v440_v29 = vpack.c.bf16 %v360_v26, %v357_v25  ;;  %v2373_v25 = vld [vmem:[%s3595_s25 + $0x4] ss:$0 sm:$0xff] }
 0x2cc   :  { %2626 = vmatmul.mubr.msk.bf16.vlgmr.msra.gmra.mrb[4].mxu1 %vm365_vm2, %v363_v18  ;;  %2630 = vmatpush3.bf16.msra.mxu0 %v440_v29 }
 0x2cd   :  { %2636 = vmatpush3.bf16.msra.mxu1 %v2835_v28  ;;  %2639 = vmatprep.mubr.msk.bf16.mxu1 %vm2965_vm1, %v2964_v46 }
 0x2ce   :  { %2637 = vmatprep.subr.bf16.mxu1 %v2964_v46  ;;  %2643 = vmatprep.subr.bf16.mxu0 %v2964_v46 }
 0x2d1   :  { %2638 = vmatpush3.bf16.msra.mxu1 %v2836_v30 }
 0x2d2   :  { %2651 = vmatprep.subr.bf16.mxu1 %v2964_v46 }
 0x2d4   :  { %2640 = vmatmul.mubr.msk.bf16.vlgmr.msra.gmra.mrb[8].mxu1 %vm65_vm0, %v3132_v2 }
 0x2d5   :  { %2652 = vmatpush3.bf16.msra.mxu1 %v2837_v31  ;;  %2655 = vmatprep.mubr.msk.bf16.mxu1 %vm2965_vm1, %v2964_v46 }
 0x2d6   :  { %2653 = vmatprep.subr.bf16.mxu1 %v2964_v46 }
 0x2d9   :  { %2654 = vmatpush3.bf16.msra.mxu1 %v2838_v32 }
 0x2da   :  { %2665 = vmatprep.subr.bf16.mxu1 %v2964_v46 }
 0x2dc   :  { %2656 = vmatmul.mubr.msk.bf16.vlgmr.msra.gmra.mrb[12].mxu1 %vm65_vm0, %v3132_v2 }
 0x2dd   :  { %2667 = vmatprep.mubr.msk.bf16.mxu1 %vm2965_vm1, %v2964_v46 }
 0x39f   :  { %v406_v33 = vpop.f32.mrb[4].mxu1 }
 0x3a0   :  { %v413_v35 = vmul.f32 0.25, %v406_v33  ;;  %v2627_v36 = vpop.f32.mrb[5].mxu1 }
 0x3a1   :  { %v409_v37 = vpop.f32.mrb[6].mxu1 }
 0x3a2   :  { %v414_v39 = vmul.f32 0.25, %v409_v37  ;;  %v2628_v40 = vpop.f32.mrb[7].mxu1  ;;  %v415_v41 = vadd.f32 %v413_v35, %v3193_v34 }
 0x3a4   :  { %v417_v42 = vsel %vm365_vm2, %v415_v41, -inf  ;;  %v416_v43 = vadd.f32 %v414_v39, %v3198_v38 }
 0x3a5   :  { %418 = vmax.xlane.f32.xlu0 %v417_v42 }
 0x3a6   :  { %v420_v48 = vsel %vm365_vm2, %v416_v43, -inf }
 0x3a7   :  { %v547_v45 = vpop.f32.mrb[8].mxu1 }
 0x3a8   :  { %v2641_v47 = vpop.f32.mrb[9].mxu1  ;;  %v3207_v50 = vadd.f32 %v2364_v44, %v547_v45 }
 0x3a9   :  { %421 = vmax.xlane.f32.xlu0 %v420_v48  ;;  %v550_v49 = vpop.f32.mrb[10].mxu1 }
 0x3aa   :  { %v3209_v51 = vadd.f32 %v2364_v44, %v550_v49  ;;  %v2642_v52 = vpop.f32.mrb[11].mxu1 }
 0x3ac   :  { %v686_v53 = vpack.c.bf16 %v3209_v51, %v3207_v50 }
 0x3af   :  { %v679_v55 = vpop.f32.mrb[12].mxu1 }
 0x3b0   :  { %v2657_v56 = vpop.f32.mrb[13].mxu1  ;;  %v680_v58 = vadd.f32 %v2382_v54, %v679_v55 }
 0x3b1   :  { %v682_v57 = vpop.f32.mrb[14].mxu1  ;;  %v2842_v56 = vld [vmem:[%s3596_s0 + $0x8] sm:$0xff]  }
 0x3b2   :  { %v683_v59 = vadd.f32 %v2382_v54, %v682_v57  ;;  %v2658_v60 = vpop.f32.mrb[15].mxu1 }
 0x3b4   :  { %v762_v61 = vpack.c.bf16 %v683_v59, %v680_v58 }
 0x3b6   :  { %2666 = vmatpush3.bf16.msra.mxu1 %v762_v61 }
 0x3b7   :  { %2677 = vmatprep.subr.bf16.mxu1 %v2964_v46 }
 0x432   :  { %v419_v62 = vpop.xlane.xlu0 %418 }
 0x433   :  { %v423_v1 = vsub.f32 %v415_v41, %v419_v62 }
 0x435   :  { %v425_v3 = vmul.f32 1.442695, %v423_v1  ;;  %v2841_v1 = vld [vmem:[%s3596_s0] sm:$0xff]  }
 0x436   :  { %v422_v4 = vpop.xlane.xlu0 %421 }
 0x437   :  { %2881 = vpow2.f32 %v425_v3  ;;  %v424_v5 = vsub.f32 %v416_v43, %v422_v4 }
 0x439   :  { %v427_v6 = vmul.f32 1.442695, %v424_v5 }
 0x43b   :  { %2883 = vpow2.f32 %v427_v6 }
 0x441   :  { %v2882_v7 = vpop.eup %2881 }
 0x442   :  { %v429_v8 = vsel %vm365_vm2, %v2882_v7, 0.0 }
 0x443   :  { %430 = vadd.xlane.f32.xlu0 %v429_v8 }
 0x445   :  { %v2884_v9 = vpop.eup %2883 }
 0x446   :  { %v432_v10 = vsel %vm365_vm2, %v2884_v9, 0.0 }
 0x447   :  { %433 = vadd.xlane.f32.xlu0 %v432_v10 }
 0x4d0   :  { %v431_v11 = vpop.xlane.xlu0 %430 }
 0x4d1   :  { %2885 = vrcp.f32 %v431_v11 }
 0x4d4   :  { %v434_v12 = vpop.xlane.xlu0 %433 }
 0x4d5   :  { %2887 = vrcp.f32 %v434_v12 }
 0x4db   :  { %v2886_v13 = vpop.eup %2885 }
 0x4dc   :  { %v436_v15 = vmul.f32 %v2886_v13, %v2882_v7  ;;  %v2394_v13 = vld [vmem:[%s3574_s5] ss:$0 sm:$0xff] }
 0x4df   :  { %v2888_v14 = vpop.eup %2887 }
 0x4e0   :  { %v438_v16 = vmul.f32 %v2888_v14, %v2884_v9 }
 0x4e2   :  { %v439_v18 = vpack.c.bf16 %v438_v16, %v436_v15 }
 0x4e4   :  { %2632 = vmatmul.mubr.msk.bf16.vlgmr.msra.gmra.mrb[8].mxu0 %vm365_vm2, %v439_v18 }
 0x4e5   :  { %2644 = vmatpush3.bf16.msra.mxu0 %v2839_v17  ;;  %2647 = vmatprep.mubr.msk.bf16.mxu0 %vm2965_vm1, %v2964_v46 }
 0x4e6   :  { %2645 = vmatprep.subr.bf16.mxu0 %v2964_v46 }
 0x4e9   :  { %2646 = vmatpush3.bf16.msra.mxu0 %v2840_v19 }
 0x4ea   :  { %2659 = vmatprep.subr.bf16.mxu0 %v2964_v46 }
 0x4ec   :  { %2648 = vmatmul.mubr.msk.bf16.vlgmr.msra.gmra.mrb[12].mxu0 %vm65_vm0, %v3132_v2 }
 0x4ed   :  { %2661 = vmatprep.mubr.msk.bf16.mxu0 %vm2965_vm1, %v2964_v46 }
 0x5b7   :  { %v478_v20 = vpop.f32.mrb[8].mxu0 }
 0x5b8   :  { %v2633_v21 = vpop.f32.mrb[9].mxu0 }
 0x5b9   :  { %v481_v22 = vpop.f32.mrb[10].mxu0 }
 0x5ba   :  { %v485_v23 = vpack.c.bf16 %v481_v22, %v478_v20  ;;  %v2634_v24 = vpop.f32.mrb[11].mxu0 }
 0x5bf   :  { %v613_v26 = vpop.f32.mrb[12].mxu0 }
 0x5c0   :  { %v2649_v27 = vpop.f32.mrb[13].mxu0  ;;  %v614_v29 = vadd.f32 %v2373_v25, %v613_v26 }
 0x5c1   :  { %v616_v28 = vpop.f32.mrb[14].mxu0 }
 0x5c2   :  { %v617_v30 = vadd.f32 %v2373_v25, %v616_v28  ;;  %v2650_v31 = vpop.f32.mrb[15].mxu0 }
 0x5c4   :  { %v687_v32 = vpack.c.bf16 %v617_v30, %v614_v29 }
 0x5c6   :  { %v692_v2 = vsel %vm365_vm2, %v687_v32, 0 }
 0x5c7   :  { %2660 = vmatpush3.bf16.xpose.msra.mxu0 %v692_v2 }
 0x5c8   :  { %2671 = vmatprep.subr.bf16.mxu0 %v2964_v46 }
 0x5ce   :  { %2662 = vmatmul.mubr.msk.bf16.vlgmr.msra.gmra.mrb[16].mxu0 %vm365_vm2, %v686_v53 }
 0x5cf   :  { %2673 = vmatprep.mubr.msk.bf16.mxu0 %vm2965_vm1, %v2964_v46  ;;  %2672 = vmatpush3.bf16.msra.mxu0 %v2842_v56  ;;  %v2846_v56 = vld [vmem:[%s3573_s4 + $0x8] sm:$0xff]  }
 0x5d0   :  { %2683 = vmatprep.subr.bf16.mxu0 %v2964_v46 }
 0x6a1   :  { %v728_v33 = vpop.f32.mrb[16].mxu0 }
 0x6a2   :  { %v735_v35 = vmul.f32 0.25, %v728_v33  ;;  %v2663_v36 = vpop.f32.mrb[17].mxu0 }
 0x6a3   :  { %v731_v37 = vpop.f32.mrb[18].mxu0 }
 0x6a4   :  { %v736_v39 = vmul.f32 0.25, %v731_v37  ;;  %v2664_v40 = vpop.f32.mrb[19].mxu0  ;;  %v737_v41 = vadd.f32 %v735_v35, %v3193_v34  ;;  %v2844_v35 = vld [vmem:[%s3572_s3 + $0x8] sm:$0xff]  }
 0x6a6   :  { %v739_v42 = vsel %vm365_vm2, %v737_v41, -inf  ;;  %v738_v43 = vadd.f32 %v736_v39, %v3198_v38 }
 0x6a7   :  { %740 = vmax.xlane.f32.xlu0 %v739_v42 }
 0x6a8   :  { %v742_v44 = vsel %vm365_vm2, %v738_v43, -inf }
 0x6ab   :  { %743 = vmax.xlane.f32.xlu0 %v742_v44  ;;  %v2395_v44 = vld [vmem:[%s3574_s5 + $0x1] ss:$0 sm:$0xff] }
 0x734   :  { %v741_v45 = vpop.xlane.xlu0 %740 }
 0x735   :  { %v745_v47 = vsub.f32 %v737_v41, %v741_v45 }
 0x737   :  { %v747_v48 = vmul.f32 1.442695, %v745_v47 }
 0x738   :  { %v744_v49 = vpop.xlane.xlu0 %743 }
 0x739   :  { %2889 = vpow2.f32 %v747_v48  ;;  %v746_v50 = vsub.f32 %v738_v43, %v744_v49 }
 0x73b   :  { %v749_v51 = vmul.f32 1.442695, %v746_v50  ;;  %v2396_v50 = vld [vmem:[%s3574_s5 + $0x2] ss:$0 sm:$0xff] }
 0x73d   :  { %2891 = vpow2.f32 %v749_v51 }
 0x743   :  { %v2890_v52 = vpop.eup %2889 }
 0x744   :  { %v751_v53 = vsel %vm365_vm2, %v2890_v52, 0.0 }
 0x745   :  { %752 = vadd.xlane.f32.xlu0 %v751_v53 }
 0x747   :  { %v2892_v54 = vpop.eup %2891 }
 0x748   :  { %v754_v55 = vsel %vm365_vm2, %v2892_v54, 0.0 }
 0x749   :  { %755 = vadd.xlane.f32.xlu1 %v754_v55  ;;  %v2845_v55 = vld [vmem:[%s3573_s4] sm:$0xff]  }
 0x7d2   :  { %v753_v57 = vpop.xlane.xlu0 %752 }
 0x7d3   :  { %2893 = vrcp.f32 %v753_v57  ;;  %v2847_v57 = vld [vmem:[%s3573_s4 + $0x10] sm:$0xff]  }
 0x7d6   :  { %v756_v58 = vpop.xlane.xlu1 %755 }
 0x7d7   :  { %2895 = vrcp.f32 %v756_v58  ;;  %v2848_v58 = vld [vmem:[%s3573_s4 + $0x18] sm:$0xff]  }
 0x7dd   :  { %v2894_v59 = vpop.eup %2893 }
 0x7de   :  { %v758_v61 = vmul.f32 %v2894_v59, %v2890_v52  ;;  %v2397_v59 = vld [vmem:[%s3574_s5 + $0x3] ss:$0 sm:$0xff] }
 0x7e1   :  { %v2896_v60 = vpop.eup %2895 }
 0x7e2   :  { %v760_v62 = vmul.f32 %v2896_v60, %v2892_v54 }
 0x7e4   :  { %v761_v3 = vpack.c.bf16 %v760_v62, %v758_v61 }
 0x7e6   :  { %2668 = vmatmul.mubr.msk.bf16.vlgmr.msra.gmra.mrb[16].mxu1 %vm365_vm2, %v761_v3 }
 0x7e7   :  { %2678 = vmatpush3.bf16.msra.mxu1 %v2841_v1  ;;  %2679 = vmatprep.mubr.msk.bf16.mxu1 %vm2965_vm1, %v2964_v46 }
 0x7e8   :  { %2691 = vmatprep.subr.bf16.mxu1 %v2964_v46 }
 0x7ee   :  { %2680 = vmatmul.mubr.msk.bf16.vlgmr.msra.gmra.mrb[20].mxu1 %vm365_vm2, %v485_v23 }
 0x7ef   :  { %2699 = vmatprep.mubr.msk.bf16.mxu1 %vm2965_vm1, %v2964_v46  ;;  %2692 = vmatpush3.bf16.msra.mxu1 %v2845_v55 }
 0x7f0   :  { %2693 = vmatprep.subr.bf16.mxu1 %v2964_v46 }
 0x7f3   :  { %2694 = vmatpush3.bf16.msra.mxu1 %v2846_v56  ;;  %v2407_v56 = vld [vmem:[%s3574_s5 + $0x5] ss:$0 sm:$0xff] }
 0x7f4   :  { %2695 = vmatprep.subr.bf16.mxu1 %v2964_v46 }
 0x7f7   :  { %2696 = vmatpush3.bf16.msra.mxu1 %v2847_v57 }
 0x7f8   :  { %2697 = vmatprep.subr.bf16.mxu1 %v2964_v46 }
 0x7fb   :  { %2698 = vmatpush3.bf16.msra.mxu1 %v2848_v58 }
 0x7fc   :  { %2719 = vmatprep.subr.bf16.mxu1 %v2964_v46 }
 0x8b9   :  { %v800_v4 = vpop.f32.mrb[16].mxu1 }
 0x8ba   :  { %v2669_v5 = vpop.f32.mrb[17].mxu1 }
 0x8bb   :  { %v803_v6 = vpop.f32.mrb[18].mxu1 }
 0x8bc   :  { %v807_v7 = vpack.c.bf16 %v803_v6, %v800_v4  ;;  %v2670_v8 = vpop.f32.mrb[19].mxu1 }
 0x8be   :  { %2674 = vmatmul.mubr.msk.bf16.vlgmr.msra.gmra.mrb[20].mxu0 %vm365_vm2, %v807_v7 }
 0x8bf   :  { %2687 = vmatprep.mubr.msk.bf16.mxu0 %vm2965_vm1, %v2964_v46 }
 0x8c1   :  { %v904_v9 = vpop.f32.mrb[20].mxu1 }
 0x8c2   :  { %v2681_v10 = vpop.f32.mrb[21].mxu1 }
 0x8c3   :  { %v907_v11 = vpop.f32.mrb[22].mxu1 }
 0x8c4   :  { %v2682_v12 = vpop.f32.mrb[23].mxu1 }
 0x991   :  { %v854_v14 = vpop.f32.mrb[20].mxu0 }
 0x992   :  { %v905_v15 = vadd.f32 %v904_v9, %v854_v14  ;;  %v2675_v16 = vpop.f32.mrb[21].mxu0 }
 0x993   :  { %v857_v17 = vpop.f32.mrb[22].mxu0 }
 0x994   :  { %v915_v18 = vadd.f32 %v2394_v13, %v905_v15  ;;  %v908_v19 = vadd.f32 %v907_v11, %v857_v17  ;;  %v2676_v20 = vpop.f32.mrb[23].mxu0 }
 0x996   :  { %v916_v21 = vadd.f32 %v2394_v13, %v908_v19  ;;  %v917_v22 = vadd.f32 %v915_v18, %v3123_v63 }
 0x998   :  { %v919_v23 = vsel %vm65_vm0, %v917_v22, 0.0  ;;  %v918_v24 = vadd.f32 %v916_v21, %v3125_v0  ;;  %v2843_v0 = vld [vmem:[%s3572_s3] sm:$0xff]  }
 0x999   :  { %920 = vadd.xlane.f32.xlu0 %v919_v23  ;;  %2684 = vmatpush3.bf16.msra.mxu0 %v2843_v0 }
 0x99a   :  { %v922_v25 = vsel %vm65_vm0, %v918_v24, 0.0  ;;  %2685 = vmatprep.subr.bf16.mxu0 %v2964_v46 }
 0x99b   :  { %923 = vadd.xlane.f32.xlu1 %v922_v25 }
 0x99d   :  { %2686 = vmatpush3.bf16.msra.mxu0 %v2844_v35 }
 0x99e   :  { %2703 = vmatprep.subr.bf16.mxu0 %v2964_v46 }
 0xa26   :  { %v921_v26 = vpop.xlane.xlu0 %920 }
 0xa27   :  { %v925_v27 = vmul.f32 0.03125, %v921_v26 }
 0xa28   :  { %v924_v28 = vpop.xlane.xlu1 %923 }
 0xa29   :  { %v927_v29 = vsub.f32 %v917_v22, %v925_v27  ;;  %v926_v30 = vmul.f32 0.03125, %v924_v28 }
 0xa2b   :  { %v928_v31 = vsub.f32 %v918_v24, %v926_v30  ;;  %v929_v32 = vmul.f32 %v927_v29, %v927_v29  ;;  %v2401_v24 = vld [vmem:[%s3574_s5 + $0x4] ss:$0 sm:$0xff] }
 0xa2d   :  { %v931_v2 = vsel %vm65_vm0, %v929_v32, 0.0  ;;  %v930_v33 = vmul.f32 %v928_v31, %v928_v31 }
 0xa2e   :  { %932 = vadd.xlane.f32.xlu0 %v931_v2 }
 0xa2f   :  { %v934_v63 = vsel %vm65_vm0, %v930_v33, 0.0 }
 0xa30   :  { %935 = vadd.xlane.f32.xlu1 %v934_v63 }
 0xabb   :  { %v933_v36 = vpop.xlane.xlu0 %932 }
 0xabc   :  { %v937_v37 = vmul.f32 0.03125, %v933_v36 }
 0xabd   :  { %v936_v39 = vpop.xlane.xlu1 %935 }
 0xabe   :  { %v939_v40 = vadd.f32 1e-12, %v937_v37  ;;  %v938_v41 = vmul.f32 0.03125, %v936_v39 }
 0xac0   :  { %2897 = vrsqrt.f32 %v939_v40  ;;  %v940_v42 = vadd.f32 1e-12, %v938_v41 }
 0xac2   :  { %2899 = vrsqrt.f32 %v940_v42 }
 0xaca   :  { %v2898_v43 = vpop.eup %2897 }
 0xacb   :  { %v943_v45 = vmul.f32 %v2898_v43, %v927_v29 }
 0xacc   :  { %v2900_v47 = vpop.eup %2899 }
 0xacd   :  { %v949_v48 = vmul.f32 %v2395_v44, %v943_v45  ;;  %v944_v49 = vmul.f32 %v2900_v47, %v928_v31  ;;  %v2850_v45 = vld [vmem:[%s3594_s8 + $0x80] sm:$0xff]   ;;  %v2851_v47 = vld [vmem:[%s3594_s8 + $0x68] sm:$0xff]  }
 0xacf   :  { %v950_v51 = vmul.f32 %v2395_v44, %v944_v49  ;;  %v955_v52 = vadd.f32 %v2396_v50, %v949_v48  ;;  %v2849_v44 = vld [vmem:[%s3594_s8 + $0x60] sm:$0xff]   ;;  %v2852_v48 = vld [vmem:[%s3594_s8 + $0x88] sm:$0xff]  }
 0xad1   :  { %v956_v53 = vadd.f32 %v2396_v50, %v950_v51 }
 0xad3   :  { %v957_v54 = vpack.c.bf16 %v956_v53, %v955_v52 }
 0xad5   :  { %2688 = vmatmul.mubr.msk.bf16.vlgmr.msra.gmra.mrb[24].mxu0 %vm65_vm0, %v957_v54 }
 0xad6   :  { %2707 = vmatprep.mubr.msk.bf16.mxu0 %vm2965_vm1, %v2964_v46  ;;  %2704 = vmatpush3.bf16.msra.mxu0 %v2849_v44 }
 0xad7   :  { %2705 = vmatprep.subr.bf16.mxu0 %v2964_v46 }
 0xada   :  { %2706 = vmatpush3.bf16.msra.mxu0 %v2851_v47 }
 0xadb   :  { %2711 = vmatprep.subr.bf16.mxu0 %v2964_v46 }
 0xba8   :  { %v1015_v60 = vpop.f32.mrb[24].mxu0 }
 0xba9   :  { %v1016_v61 = vadd.f32 %v2397_v59, %v1015_v60  ;;  %v2689_v62 = vpop.f32.mrb[25].mxu0 }
 0xbaa   :  { %v1018_v1 = vpop.f32.mrb[26].mxu0 }
 0xbab   :  { %v1024_v3 = vmul.f32 0.044715, %v1016_v61  ;;  %v1019_v4 = vadd.f32 %v2397_v59, %v1018_v1  ;;  %v2690_v5 = vpop.f32.mrb[27].mxu0  ;;  %v1022_v18 = vmul.f32 0.5, %v1016_v61 }
 0xbad   :  { %v1026_v6 = vmul.f32 %v1024_v3, %v1016_v61  ;;  %v1025_v7 = vmul.f32 0.044715, %v1019_v4  ;;  %v1023_v19 = vmul.f32 0.5, %v1019_v4 }
 0xbaf   :  { %v1028_v8 = vmul.f32 %v1026_v6, %v1016_v61  ;;  %v1027_v9 = vmul.f32 %v1025_v7, %v1019_v4  ;;  %v2854_v6 = vld [vmem:[%s3594_s8 + $0x78] sm:$0xff]   ;;  %v2421_v7 = vld [vmem:[%s3595_s25 + $0x6] ss:$0 sm:$0xff] }
 0xbb1   :  { %v1030_v10 = vadd.f32 %v1028_v8, %v1016_v61  ;;  %v1029_v11 = vmul.f32 %v1027_v9, %v1019_v4  ;;  %v2408_v61 = vld [vmem:[%s3574_s5 + $0x6] ss:$0 sm:$0xff]  ;;  %v2439_v9 = vld [vmem:[%s3595_s25 + $0x8] ss:$0 sm:$0xff] }
 0xbb3   :  { %v1032_v12 = vmul.f32 0.7978846, %v1030_v10  ;;  %v1031_v13 = vadd.f32 %v1029_v11, %v1019_v4  ;;  %v2853_v4 = vld [vmem:[%s3594_s8 + $0x70] sm:$0xff]  }
 0xbb5   :  { %2901 = vtanh.f32 %v1032_v12  ;;  %v1033_v14 = vmul.f32 0.7978846, %v1031_v13 }
 0xbb7   :  { %2903 = vtanh.f32 %v1033_v14 }
 0xbbf   :  { %v2902_v15 = vpop.eup %2901 }
 0xbc0   :  { %v1036_v16 = vadd.f32 1.0, %v2902_v15 }
 0xbc1   :  { %v2904_v17 = vpop.eup %2903 }
 0xbc2   :  { %v1037_v20 = vadd.f32 1.0, %v2904_v17  ;;  %v1038_v21 = vmul.f32 %v1036_v16, %v1022_v18 }
 0xbc4   :  { %v1039_v22 = vmul.f32 %v1037_v20, %v1023_v19 }
 0xbc6   :  { %v1040_v23 = vpack.c.bf16 %v1039_v22, %v1038_v21 }
 0xbc8   :  { %2700 = vmatmul.mubr.msk.bf16.vlgmr.msra.gmra.mrb[24].mxu1 %vm1077_vm3, %v1040_v23  ;;  %v2430_v23 = vld [vmem:[%s3595_s25 + $0x7] ss:$0 sm:$0xff] }
 0xbc9   :  { %2723 = vmatprep.mubr.msk.bf16.mxu1 %vm2965_vm1, %v2964_v46  ;;  %2720 = vmatpush3.bf16.msra.mxu1 %v2850_v45  ;;  %v2452_v45 = vld [vmem:[%s3595_s25 + $0x9] ss:$0 sm:$0xff] }
 0xbca   :  { %2721 = vmatprep.subr.bf16.mxu1 %v2964_v46 }
 0xbcd   :  { %2722 = vmatpush3.bf16.msra.mxu1 %v2852_v48 }
 0xbce   :  { %2733 = vmatprep.subr.bf16.mxu1 %v2964_v46 }
 0xc9b   :  { %v1115_v25 = vpop.f32.mrb[24].mxu1 }
 0xc9c   :  { %v1116_v26 = vadd.f32 %v2401_v24, %v1115_v25  ;;  %v2701_v27 = vpop.f32.mrb[25].mxu1 }
 0xc9d   :  { %v1118_v28 = vpop.f32.mrb[26].mxu1 }
 0xc9e   :  { %v1119_v29 = vadd.f32 %v2401_v24, %v1118_v28  ;;  %v2702_v30 = vpop.f32.mrb[27].mxu1  ;;  %v1122_v31 = vadd.f32 %v1116_v26, %v955_v52 }
 0xca0   :  { %v1124_v32 = vsel %vm65_vm0, %v1122_v31, 0.0  ;;  %v1123_v2 = vadd.f32 %v1119_v29, %v956_v53 }
 0xca1   :  { %1125 = vadd.xlane.f32.xlu0 %v1124_v32  ;;  %v2855_v32 = vld [vmem:[%s3594_s8 + $0x90] sm:$0xff]  }
 0xca2   :  { %v1127_v33 = vsel %vm65_vm0, %v1123_v2, 0.0 }
 0xca3   :  { %1128 = vadd.xlane.f32.xlu1 %v1127_v33  ;;  %v2857_v33 = vld [vmem:[%s3594_s8 + $0xb0] sm:$0xff]  }
 0xd2e   :  { %v1126_v63 = vpop.xlane.xlu0 %1125 }
 0xd2f   :  { %v1130_v0 = vmul.f32 0.03125, %v1126_v63  ;;  %v2858_v63 = vld [vmem:[%s3594_s8 + $0xb8] sm:$0xff]  }
 0xd30   :  { %v1129_v35 = vpop.xlane.xlu1 %1128 }
 0xd31   :  { %v1132_v36 = vsub.f32 %v1122_v31, %v1130_v0  ;;  %v1131_v37 = vmul.f32 0.03125, %v1129_v35 }
 0xd33   :  { %v1133_v39 = vsub.f32 %v1123_v2, %v1131_v37  ;;  %v1134_v40 = vmul.f32 %v1132_v36, %v1132_v36  ;;  %v2856_v2 = vld [vmem:[%s3594_s8 + $0x98] sm:$0xff]  }
 0xd35   :  { %v1136_v41 = vsel %vm65_vm0, %v1134_v40, 0.0  ;;  %v1135_v42 = vmul.f32 %v1133_v39, %v1133_v39 }
 0xd36   :  { %1137 = vadd.xlane.f32.xlu0 %v1136_v41 }
 0xd37   :  { %v1139_v43 = vsel %vm65_vm0, %v1135_v42, 0.0 }
 0xd38   :  { %1140 = vadd.xlane.f32.xlu1 %v1139_v43 }
 0xdc3   :  { %v1138_v49 = vpop.xlane.xlu0 %1137 }
 0xdc4   :  { %v1142_v50 = vmul.f32 0.03125, %v1138_v49 }
 0xdc5   :  { %v1141_v51 = vpop.xlane.xlu1 %1140 }
 0xdc6   :  { %v1144_v52 = vadd.f32 1e-12, %v1142_v50  ;;  %v1143_v53 = vmul.f32 0.03125, %v1141_v51 }
 0xdc8   :  { %2905 = vrsqrt.f32 %v1144_v52  ;;  %v1145_v54 = vadd.f32 1e-12, %v1143_v53 }
 0xdca   :  { %2907 = vrsqrt.f32 %v1145_v54  ;;  %v2470_v54 = vld [vmem:[%s3595_s25 + $0xb] ss:$0 sm:$0xff] }
 0xdd2   :  { %v2906_v55 = vpop.eup %2905 }
 0xdd3   :  { %v1148_v57 = vmul.f32 %v2906_v55, %v1132_v36 }
 0xdd4   :  { %v2908_v58 = vpop.eup %2907 }
 0xdd5   :  { %v1154_v59 = vmul.f32 %v2407_v56, %v1148_v57  ;;  %v1149_v60 = vmul.f32 %v2908_v58, %v1133_v39 }
 0xdd7   :  { %v1155_v62 = vmul.f32 %v2407_v56, %v1149_v60  ;;  %v3342_v1 = vadd.f32 %v2408_v61, %v1154_v59 }
 0xdd9   :  { %v3344_v3 = vadd.f32 %v2408_v61, %v1155_v62 }
 0xddb   :  { %v3351_v5 = vpack.c.bf16 %v3344_v3, %v3342_v1 }
 0xddd   :  { %2708 = vmatmul.mubr.msk.bf16.vlgmr.msra.gmra.mrb[28].mxu0 %vm65_vm0, %v3351_v5  ;;  %2724 = vmatmul.mubr.msk.bf16.vlgmr.msra.gmra.mrb[28].mxu1 %vm65_vm0, %v3351_v5 }
 0xdde   :  { %2712 = vmatpush3.bf16.msra.mxu0 %v2853_v4  ;;  %2715 = vmatprep.mubr.msk.bf16.mxu0 %vm2965_vm1, %v2964_v46 }
 0xddf   :  { %2713 = vmatprep.subr.bf16.mxu0 %v2964_v46  ;;  %2735 = vmatprep.mubr.msk.bf16.mxu1 %vm2965_vm1, %v2964_v46 }
 0xde2   :  { %2714 = vmatpush3.bf16.msra.mxu0 %v2854_v6 }
 0xde3   :  { %2727 = vmatprep.subr.bf16.mxu0 %v2964_v46 }
 0xde5   :  { %2716 = vmatmul.mubr.msk.bf16.vlgmr.msra.gmra.mrb[32].mxu0 %vm65_vm0, %v3351_v5 }
 0xde6   :  { %2729 = vmatprep.mubr.msk.bf16.mxu0 %vm2965_vm1, %v2964_v46 }
 0xeb0   :  { %v1233_v8 = vpop.f32.mrb[28].mxu0  ;;  %v1365_v10 = vpop.f32.mrb[28].mxu1 }
 0xeb1   :  { %v2709_v11 = vpop.f32.mrb[29].mxu0  ;;  %v2725_v12 = vpop.f32.mrb[29].mxu1  ;;  %v1234_v15 = vadd.f32 %v2421_v7, %v1233_v8  ;;  %v1366_v16 = vadd.f32 %v2439_v9, %v1365_v10 }
 0xeb2   :  { %v1236_v13 = vpop.f32.mrb[30].mxu0  ;;  %v1368_v14 = vpop.f32.mrb[30].mxu1 }
 0xeb3   :  { %v1237_v17 = vadd.f32 %v2421_v7, %v1236_v13  ;;  %v1369_v18 = vadd.f32 %v2439_v9, %v1368_v14  ;;  %v2710_v19 = vpop.f32.mrb[31].mxu0  ;;  %v2726_v20 = vpop.f32.mrb[31].mxu1 }
 0xeb4   :  { %v2859_v20 = vld [vmem:[%s3594_s8 + $0xa0] sm:$0xff]  }
 0xeb5   :  { %v1372_v21 = vpack.c.bf16 %v1237_v17, %v1234_v15  ;;  %v1448_v22 = vpack.c.bf16 %v1369_v18, %v1366_v16 }
 0xeb7   :  { %2734 = vmatpush3.bf16.msra.mxu1 %v1448_v22  ;;  %v2860_v22 = vld [vmem:[%s3594_s8 + $0xa8] sm:$0xff]  }
 0xeb8   :  { %v1299_v24 = vpop.f32.mrb[32].mxu0  ;;  %2747 = vmatprep.subr.bf16.mxu1 %v2964_v46 }
 0xeb9   :  { %v2717_v25 = vpop.f32.mrb[33].mxu0  ;;  %v1300_v27 = vadd.f32 %v2430_v23, %v1299_v24 }
 0xeba   :  { %v1302_v26 = vpop.f32.mrb[34].mxu0 }
 0xebb   :  { %v1303_v28 = vadd.f32 %v2430_v23, %v1302_v26  ;;  %v2718_v29 = vpop.f32.mrb[35].mxu0 }
 0xebd   :  { %v1373_v30 = vpack.c.bf16 %v1303_v28, %v1300_v27  ;;  %v2461_v28 = vld [vmem:[%s3595_s25 + $0xa] ss:$0 sm:$0xff] }
 0xebf   :  { %v1378_v31 = vsel %vm365_vm2, %v1373_v30, 0 }
 0xec0   :  { %2728 = vmatpush3.bf16.xpose.msra.mxu0 %v1378_v31 }
 0xec1   :  { %2739 = vmatprep.subr.bf16.mxu0 %v2964_v46 }
 0xec7   :  { %2730 = vmatmul.mubr.msk.bf16.vlgmr.msra.gmra.mrb[36].mxu0 %vm365_vm2, %v1372_v21 }
 0xec8   :  { %2740 = vmatpush3.bf16.msra.mxu0 %v2855_v32  ;;  %2743 = vmatprep.mubr.msk.bf16.mxu0 %vm2965_vm1, %v2964_v46 }
 0xec9   :  { %2741 = vmatprep.subr.bf16.mxu0 %v2964_v46 }
 0xecc   :  { %2742 = vmatpush3.bf16.msra.mxu0 %v2856_v2 }
 0xecd   :  { %2755 = vmatprep.subr.bf16.mxu0 %v2964_v46 }
 0xecf   :  { %2744 = vmatmul.mubr.msk.bf16.vlgmr.msra.gmra.mrb[40].mxu0 %vm65_vm0, %v3351_v5 }
 0xed0   :  { %2756 = vmatpush3.bf16.msra.mxu0 %v2857_v33  ;;  %2759 = vmatprep.mubr.msk.bf16.mxu0 %vm2965_vm1, %v2964_v46 }
 0xed1   :  { %2757 = vmatprep.subr.bf16.mxu0 %v2964_v46 }
 0xed4   :  { %2758 = vmatpush3.bf16.msra.mxu0 %v2858_v63 }
 0xed5   :  { %2769 = vmatprep.subr.bf16.mxu0 %v2964_v46 }
 0xed7   :  { %2760 = vmatmul.mubr.msk.bf16.vlgmr.msra.gmra.mrb[44].mxu0 %vm65_vm0, %v3351_v5 }
 0xed8   :  { %2771 = vmatprep.mubr.msk.bf16.mxu0 %vm2965_vm1, %v2964_v46 }
 0xf9a   :  { %v1414_v0 = vpop.f32.mrb[36].mxu0 }
 0xf9b   :  { %v1421_v35 = vmul.f32 0.25, %v1414_v0  ;;  %v2731_v36 = vpop.f32.mrb[37].mxu0 }
 0xf9c   :  { %v1417_v37 = vpop.f32.mrb[38].mxu0 }
 0xf9d   :  { %v1422_v39 = vmul.f32 0.25, %v1417_v37  ;;  %v2732_v40 = vpop.f32.mrb[39].mxu0  ;;  %v1423_v41 = vadd.f32 %v1421_v35, %v3193_v34 }
 0xf9f   :  { %v1425_v42 = vsel %vm365_vm2, %v1423_v41, -inf  ;;  %v1424_v43 = vadd.f32 %v1422_v39, %v3198_v38 }
 0xfa0   :  { %1426 = vmax.xlane.f32.xlu0 %v1425_v42 }
 0xfa1   :  { %v1428_v44 = vsel %vm365_vm2, %v1424_v43, -inf }
 0xfa2   :  { %1429 = vmax.xlane.f32.xlu1 %v1428_v44  ;;  %v1556_v47 = vpop.f32.mrb[40].mxu0 }
 0xfa3   :  { %v2745_v48 = vpop.f32.mrb[41].mxu0  ;;  %v3416_v50 = vadd.f32 %v2452_v45, %v1556_v47 }
 0xfa4   :  { %v1559_v49 = vpop.f32.mrb[42].mxu0 }
 0xfa5   :  { %v3418_v51 = vadd.f32 %v2452_v45, %v1559_v49  ;;  %v2746_v52 = vpop.f32.mrb[43].mxu0 }
 0xfa7   :  { %v1695_v53 = vpack.c.bf16 %v3418_v51, %v3416_v50 }
 0xfaa   :  { %v1688_v55 = vpop.f32.mrb[44].mxu0 }
 0xfab   :  { %v2761_v56 = vpop.f32.mrb[45].mxu0  ;;  %v1689_v58 = vadd.f32 %v2470_v54, %v1688_v55 }
 0xfac   :  { %v1691_v57 = vpop.f32.mrb[46].mxu0 }
 0xfad   :  { %v1692_v59 = vadd.f32 %v2470_v54, %v1691_v57  ;;  %v2762_v60 = vpop.f32.mrb[47].mxu0 }
 0xfaf   :  { %v1771_v61 = vpack.c.bf16 %v1692_v59, %v1689_v58 }
 0xfb1   :  { %2770 = vmatpush3.bf16.msra.mxu0 %v1771_v61  ;;  %v2861_v61 = vld [vmem:[%s3596_s0 + $0x10] sm:$0xff]  }
 0xfb2   :  { %2781 = vmatprep.subr.bf16.mxu0 %v2964_v46 }
0x102d   :  { %v1427_v62 = vpop.xlane.xlu0 %1426 }
0x102e   :  { %v1431_v4 = vsub.f32 %v1423_v41, %v1427_v62 }
0x102f   :  { %v1430_v6 = vpop.xlane.xlu1 %1429 }
0x1030   :  { %v1433_v7 = vmul.f32 1.442695, %v1431_v4  ;;  %v1432_v8 = vsub.f32 %v1424_v43, %v1430_v6 }
0x1032   :  { %2909 = vpow2.f32 %v1433_v7  ;;  %v1435_v9 = vmul.f32 1.442695, %v1432_v8 }
0x1034   :  { %2911 = vpow2.f32 %v1435_v9 }
0x103c   :  { %v2910_v10 = vpop.eup %2909 }
0x103d   :  { %v1437_v11 = vsel %vm365_vm2, %v2910_v10, 0.0 }
0x103e   :  { %v2912_v12 = vpop.eup %2911  ;;  %1438 = vadd.xlane.f32.xlu0 %v1437_v11 }
0x103f   :  { %v1440_v13 = vsel %vm365_vm2, %v2912_v12, 0.0 }
0x1040   :  { %1441 = vadd.xlane.f32.xlu1 %v1440_v13 }
0x10cb   :  { %v1439_v14 = vpop.xlane.xlu0 %1438 }
0x10cc   :  { %2913 = vrcp.f32 %v1439_v14  ;;  %v2482_v14 = vld [vmem:[%s3574_s5 + $0x8] ss:$0 sm:$0xff] }
0x10cd   :  { %v1442_v15 = vpop.xlane.xlu1 %1441 }
0x10ce   :  { %2915 = vrcp.f32 %v1442_v15 }
0x10d6   :  { %v2914_v16 = vpop.eup %2913 }
0x10d7   :  { %v1444_v18 = vmul.f32 %v2914_v16, %v2910_v10 }
0x10d8   :  { %v2916_v17 = vpop.eup %2915 }
0x10d9   :  { %v1446_v19 = vmul.f32 %v2916_v17, %v2912_v12 }
0x10db   :  { %v1447_v21 = vpack.c.bf16 %v1446_v19, %v1444_v18 }
0x10dd   :  { %2736 = vmatmul.mubr.msk.bf16.vlgmr.msra.gmra.mrb[32].mxu1 %vm365_vm2, %v1447_v21 }
0x10de   :  { %2748 = vmatpush3.bf16.msra.mxu1 %v2859_v20  ;;  %2751 = vmatprep.mubr.msk.bf16.mxu1 %vm2965_vm1, %v2964_v46 }
0x10df   :  { %2749 = vmatprep.subr.bf16.mxu1 %v2964_v46 }
0x10e2   :  { %2750 = vmatpush3.bf16.msra.mxu1 %v2860_v22 }
0x10e3   :  { %2763 = vmatprep.subr.bf16.mxu1 %v2964_v46 }
0x10e5   :  { %2752 = vmatmul.mubr.msk.bf16.vlgmr.msra.gmra.mrb[36].mxu1 %vm65_vm0, %v3351_v5 }
0x10e6   :  { %2765 = vmatprep.mubr.msk.bf16.mxu1 %vm2965_vm1, %v2964_v46 }
0x11b0   :  { %v1486_v23 = vpop.f32.mrb[32].mxu1 }
0x11b1   :  { %v2737_v24 = vpop.f32.mrb[33].mxu1 }
0x11b2   :  { %v1489_v25 = vpop.f32.mrb[34].mxu1 }
0x11b3   :  { %v1493_v26 = vpack.c.bf16 %v1489_v25, %v1486_v23  ;;  %v2738_v27 = vpop.f32.mrb[35].mxu1 }
0x11b8   :  { %v1622_v29 = vpop.f32.mrb[36].mxu1 }
0x11b9   :  { %v2753_v30 = vpop.f32.mrb[37].mxu1  ;;  %v1623_v32 = vadd.f32 %v2461_v28, %v1622_v29 }
0x11ba   :  { %v1625_v31 = vpop.f32.mrb[38].mxu1 }
0x11bb   :  { %v1626_v2 = vadd.f32 %v2461_v28, %v1625_v31  ;;  %v2754_v33 = vpop.f32.mrb[39].mxu1 }
0x11bd   :  { %v1696_v63 = vpack.c.bf16 %v1626_v2, %v1623_v32 }
0x11bf   :  { %v1701_v5 = vsel %vm365_vm2, %v1696_v63, 0 }
0x11c0   :  { %2764 = vmatpush3.bf16.xpose.msra.mxu1 %v1701_v5  ;;  %v2864_v5 = vld [vmem:[%s3572_s3 + $0x18] sm:$0xff]  }
0x11c1   :  { %2775 = vmatprep.subr.bf16.mxu1 %v2964_v46 }
0x11c7   :  { %2766 = vmatmul.mubr.msk.bf16.vlgmr.msra.gmra.mrb[40].mxu1 %vm365_vm2, %v1695_v53 }
0x11c8   :  { %2777 = vmatprep.mubr.msk.bf16.mxu1 %vm2965_vm1, %v2964_v46 }
0x129a   :  { %v1737_v0 = vpop.f32.mrb[40].mxu1 }
0x129b   :  { %v1744_v35 = vmul.f32 0.25, %v1737_v0  ;;  %v2767_v36 = vpop.f32.mrb[41].mxu1 }
0x129c   :  { %v1740_v37 = vpop.f32.mrb[42].mxu1 }
0x129d   :  { %v1745_v39 = vmul.f32 0.25, %v1740_v37  ;;  %v2768_v40 = vpop.f32.mrb[43].mxu1  ;;  %v1746_v41 = vadd.f32 %v1744_v35, %v3193_v34 }
0x129f   :  { %v1748_v42 = vsel %vm365_vm2, %v1746_v41, -inf  ;;  %v1747_v43 = vadd.f32 %v1745_v39, %v3198_v38  ;;  %v2862_v38 = vld [vmem:[%s3596_s0 + $0x18] sm:$0xff]  }
0x12a0   :  { %1749 = vmax.xlane.f32.xlu0 %v1748_v42  ;;  %2776 = vmatpush3.bf16.msra.mxu1 %v2862_v38  ;;  %v2483_v42 = vld [vmem:[%s3574_s5 + $0x9] ss:$0 sm:$0xff]  ;;  %v2868_v38 = vld [vmem:[%s3573_s4 + $0x38] sm:$0xff]  }
0x12a1   :  { %v1751_v44 = vsel %vm365_vm2, %v1747_v43, -inf  ;;  %2787 = vmatprep.subr.bf16.mxu1 %v2964_v46 }
0x12a2   :  { %1752 = vmax.xlane.f32.xlu1 %v1751_v44 }
0x132d   :  { %v1750_v45 = vpop.xlane.xlu0 %1749 }
0x132e   :  { %v1754_v47 = vsub.f32 %v1746_v41, %v1750_v45 }
0x132f   :  { %v1753_v48 = vpop.xlane.xlu1 %1752 }
0x1330   :  { %v1756_v49 = vmul.f32 1.442695, %v1754_v47  ;;  %v1755_v50 = vsub.f32 %v1747_v43, %v1753_v48  ;;  %v2484_v48 = vld [vmem:[%s3574_s5 + $0xa] ss:$0 sm:$0xff] }
0x1332   :  { %2917 = vpow2.f32 %v1756_v49  ;;  %v1758_v51 = vmul.f32 1.442695, %v1755_v50 }
0x1334   :  { %2919 = vpow2.f32 %v1758_v51 }
0x133c   :  { %v2918_v52 = vpop.eup %2917 }
0x133d   :  { %v1760_v53 = vsel %vm365_vm2, %v2918_v52, 0.0 }
0x133e   :  { %v2920_v34 = vpop.eup %2919  ;;  %1761 = vadd.xlane.f32.xlu0 %v1760_v53  ;;  %v2865_v53 = vld [vmem:[%s3573_s4 + $0x20] sm:$0xff]  }
0x133f   :  { %v1763_v54 = vsel %vm365_vm2, %v2920_v34, 0.0 }
0x1340   :  { %1764 = vadd.xlane.f32.xlu1 %v1763_v54  ;;  %v2867_v54 = vld [vmem:[%s3573_s4 + $0x30] sm:$0xff]  }
0x13cb   :  { %v1762_v55 = vpop.xlane.xlu0 %1761 }
0x13cc   :  { %2921 = vrcp.f32 %v1762_v55  ;;  %v2489_v55 = vld [vmem:[%s3574_s5 + $0xb] ss:$0 sm:$0xff] }
0x13cd   :  { %v1765_v56 = vpop.xlane.xlu1 %1764 }
0x13ce   :  { %2923 = vrcp.f32 %v1765_v56 }
0x13d6   :  { %v2922_v57 = vpop.eup %2921 }
0x13d7   :  { %v1767_v59 = vmul.f32 %v2922_v57, %v2918_v52 }
0x13d8   :  { %v2924_v58 = vpop.eup %2923 }
0x13d9   :  { %v1769_v60 = vmul.f32 %v2924_v58, %v2920_v34  ;;  %v2866_v34 = vld [vmem:[%s3573_s4 + $0x28] sm:$0xff]  }
0x13db   :  { %v1770_v62 = vpack.c.bf16 %v1769_v60, %v1767_v59 }
0x13dd   :  { %2772 = vmatmul.mubr.msk.bf16.vlgmr.msra.gmra.mrb[48].mxu0 %vm365_vm2, %v1770_v62 }
0x13de   :  { %2782 = vmatpush3.bf16.msra.mxu0 %v2861_v61  ;;  %2783 = vmatprep.mubr.msk.bf16.mxu0 %vm2965_vm1, %v2964_v46 }
0x13df   :  { %2795 = vmatprep.subr.bf16.mxu0 %v2964_v46 }
0x13e5   :  { %2784 = vmatmul.mubr.msk.bf16.vlgmr.msra.gmra.mrb[52].mxu0 %vm365_vm2, %v1493_v26 }
0x13e6   :  { %2803 = vmatprep.mubr.msk.bf16.mxu0 %vm2965_vm1, %v2964_v46  ;;  %2796 = vmatpush3.bf16.msra.mxu0 %v2865_v53  ;;  %v2508_v53 = vld [vmem:[%s3574_s5 + $0xe] ss:$0 sm:$0xff] }
0x13e7   :  { %2797 = vmatprep.subr.bf16.mxu0 %v2964_v46 }
0x13ea   :  { %2798 = vmatpush3.bf16.msra.mxu0 %v2866_v34 }
0x13eb   :  { %2799 = vmatprep.subr.bf16.mxu0 %v2964_v46 }
0x13ee   :  { %2800 = vmatpush3.bf16.msra.mxu0 %v2867_v54 }
0x13ef   :  { %2801 = vmatprep.subr.bf16.mxu0 %v2964_v46 }
0x13f2   :  { %2802 = vmatpush3.bf16.msra.mxu0 %v2868_v38 }
0x14b0   :  { %v1809_v4 = vpop.f32.mrb[48].mxu0 }
0x14b1   :  { %v2773_v6 = vpop.f32.mrb[49].mxu0 }
0x14b2   :  { %v1812_v7 = vpop.f32.mrb[50].mxu0 }
0x14b3   :  { %v1816_v8 = vpack.c.bf16 %v1812_v7, %v1809_v4  ;;  %v2774_v9 = vpop.f32.mrb[51].mxu0 }
0x14b5   :  { %2778 = vmatmul.mubr.msk.bf16.vlgmr.msra.gmra.mrb[44].mxu1 %vm365_vm2, %v1816_v8 }
0x14b6   :  { %2791 = vmatprep.mubr.msk.bf16.mxu1 %vm2965_vm1, %v2964_v46 }
0x14b8   :  { %v1913_v10 = vpop.f32.mrb[52].mxu0 }
0x14b9   :  { %v2785_v11 = vpop.f32.mrb[53].mxu0 }
0x14ba   :  { %v1916_v12 = vpop.f32.mrb[54].mxu0 }
0x14bb   :  { %v2786_v13 = vpop.f32.mrb[55].mxu0 }
0x1588   :  { %v1863_v15 = vpop.f32.mrb[44].mxu1 }
0x1589   :  { %v1914_v16 = vadd.f32 %v1913_v10, %v1863_v15  ;;  %v2779_v17 = vpop.f32.mrb[45].mxu1 }
0x158a   :  { %v1866_v18 = vpop.f32.mrb[46].mxu1 }
0x158b   :  { %v1924_v19 = vadd.f32 %v2482_v14, %v1914_v16  ;;  %v1917_v20 = vadd.f32 %v1916_v12, %v1866_v18  ;;  %v2780_v21 = vpop.f32.mrb[47].mxu1 }
0x158d   :  { %v1925_v22 = vadd.f32 %v2482_v14, %v1917_v20  ;;  %v1926_v23 = vadd.f32 %v1924_v19, %v3342_v1 }
0x158f   :  { %v1928_v24 = vsel %vm65_vm0, %v1926_v23, 0.0  ;;  %v1927_v25 = vadd.f32 %v1925_v22, %v3344_v3  ;;  %v2863_v3 = vld [vmem:[%s3572_s3 + $0x10] sm:$0xff]  }
0x1590   :  { %1929 = vadd.xlane.f32.xlu0 %v1928_v24  ;;  %2788 = vmatpush3.bf16.msra.mxu1 %v2863_v3 }
0x1591   :  { %v1931_v26 = vsel %vm65_vm0, %v1927_v25, 0.0  ;;  %2789 = vmatprep.subr.bf16.mxu1 %v2964_v46 }
0x1592   :  { %1932 = vadd.xlane.f32.xlu1 %v1931_v26 }
0x1594   :  { %2790 = vmatpush3.bf16.msra.mxu1 %v2864_v5 }
0x1595   :  { %2807 = vmatprep.subr.bf16.mxu1 %v2964_v46 }
0x161d   :  { %v1930_v27 = vpop.xlane.xlu0 %1929 }
0x161e   :  { %v1934_v28 = vmul.f32 0.03125, %v1930_v27 }
0x161f   :  { %v1933_v29 = vpop.xlane.xlu1 %1932 }
0x1620   :  { %v1936_v30 = vsub.f32 %v1926_v23, %v1934_v28  ;;  %v1935_v31 = vmul.f32 0.03125, %v1933_v29  ;;  %v2501_v23 = vld [vmem:[%s3574_s5 + $0xc] ss:$0 sm:$0xff] }
0x1622   :  { %v1937_v32 = vsub.f32 %v1927_v25, %v1935_v31  ;;  %v1938_v2 = vmul.f32 %v1936_v30, %v1936_v30 }
0x1624   :  { %v1940_v33 = vsel %vm65_vm0, %v1938_v2, 0.0  ;;  %v1939_v63 = vmul.f32 %v1937_v32, %v1937_v32 }
0x1625   :  { %1941 = vadd.xlane.f32.xlu0 %v1940_v33 }
0x1626   :  { %v1943_v1 = vsel %vm65_vm0, %v1939_v63, 0.0 }
0x1627   :  { %1944 = vadd.xlane.f32.xlu1 %v1943_v1 }
0x16b2   :  { %v1942_v0 = vpop.xlane.xlu0 %1941 }
0x16b3   :  { %v1946_v35 = vmul.f32 0.03125, %v1942_v0 }
0x16b4   :  { %v1945_v36 = vpop.xlane.xlu1 %1944 }
0x16b5   :  { %v1948_v37 = vadd.f32 1e-12, %v1946_v35  ;;  %v1947_v39 = vmul.f32 0.03125, %v1945_v36 }
0x16b7   :  { %2925 = vrsqrt.f32 %v1948_v37  ;;  %v1949_v40 = vadd.f32 1e-12, %v1947_v39 }
0x16b9   :  { %2927 = vrsqrt.f32 %v1949_v40  ;;  %v2869_v40 = vld [vmem:[%s3583_s14] sm:$0xff]  }
0x16c1   :  { %v2926_v41 = vpop.eup %2925 }
0x16c2   :  { %v1952_v43 = vmul.f32 %v2926_v41, %v1936_v30  ;;  %v2870_v41 = vld [vmem:[%s3583_s14 + $0x8] sm:$0xff]  }
0x16c3   :  { %v2928_v44 = vpop.eup %2927 }
0x16c4   :  { %v1958_v45 = vmul.f32 %v2483_v42, %v1952_v43  ;;  %v1953_v47 = vmul.f32 %v2928_v44, %v1937_v32 }
0x16c6   :  { %v1959_v49 = vmul.f32 %v2483_v42, %v1953_v47  ;;  %v1964_v50 = vadd.f32 %v2484_v48, %v1958_v45 }
0x16c8   :  { %v1965_v51 = vadd.f32 %v2484_v48, %v1959_v49 }
0x16ca   :  { %v1966_v52 = vpack.c.bf16 %v1965_v51, %v1964_v50 }
0x16cc   :  { %2792 = vmatmul.mubr.msk.bf16.vlgmr.msra.gmra.mrb[48].mxu1 %vm65_vm0, %v1966_v52 }
0x16cd   :  { %2811 = vmatprep.mubr.msk.bf16.mxu1 %vm2965_vm1, %v2964_v46  ;;  %2808 = vmatpush3.bf16.msra.mxu1 %v2869_v40 }
0x16ce   :  { %2809 = vmatprep.subr.bf16.mxu1 %v2964_v46 }
0x16d1   :  { %2810 = vmatpush3.bf16.msra.mxu1 %v2870_v41 }
0x16d2   :  { %2815 = vmatprep.subr.bf16.mxu1 %v2964_v46 }
0x179f   :  { %v2025_v56 = vpop.f32.mrb[48].mxu1 }
0x17a0   :  { %v2026_v57 = vadd.f32 %v2489_v55, %v2025_v56  ;;  %v2793_v58 = vpop.f32.mrb[49].mxu1 }
0x17a1   :  { %v2028_v59 = vpop.f32.mrb[50].mxu1 }
0x17a2   :  { %v2034_v60 = vmul.f32 0.044715, %v2026_v57  ;;  %v2029_v61 = vadd.f32 %v2489_v55, %v2028_v59  ;;  %v2794_v62 = vpop.f32.mrb[51].mxu1  ;;  %v2032_v17 = vmul.f32 0.5, %v2026_v57 }
0x17a4   :  { %v2036_v4 = vmul.f32 %v2034_v60, %v2026_v57  ;;  %v2035_v6 = vmul.f32 0.044715, %v2029_v61  ;;  %v2033_v18 = vmul.f32 0.5, %v2029_v61 }
0x17a6   :  { %v2038_v7 = vmul.f32 %v2036_v4, %v2026_v57  ;;  %v2037_v8 = vmul.f32 %v2035_v6, %v2029_v61  ;;  %v2871_v6 = vld [vmem:[%s3585_s16] sm:$0xff]  }
0x17a8   :  { %v2040_v9 = vadd.f32 %v2038_v7, %v2026_v57  ;;  %v2039_v10 = vmul.f32 %v2037_v8, %v2029_v61  ;;  %v2872_v7 = vld [vmem:[%s3585_s16 + $0x8] sm:$0xff]   ;;  %v2509_v8 = vld [vmem:[%s3584_s15] ss:$0 sm:$0xff]  ;;  %s2966_s16 = smov [#allocation2]  }
0x17a9   :  { %s2324_s6 = sshll.u32 %s2966_s16, 4  ;;  %s2325_s6 = int_to_ptr.vmem [resolvable:$true] %s2324_s6 }
0x17aa   :  { %v2042_v11 = vmul.f32 0.7978846, %v2040_v9  ;;  %v2041_v12 = vadd.f32 %v2039_v10, %v2029_v61  ;;  %s2939_s15 = scalar_lea.vmem %s2325_s6, 32  ;;  %p2944_p1 = scmp.lt.s32.totalorder %s2325_s6, %s2325_s6 }
0x17ab   :  { %p2940_p0 = scmp.ne.s32.totalorder %s2325_s6, %s2939_s15  ;;  %p2945_p2 = scmp.lt.s32.totalorder %s2939_s15, %s2939_s15 }
0x17ac   :  { %2929 = vtanh.f32 %v2042_v11  ;;  %v2043_v13 = vmul.f32 0.7978846, %v2041_v12 }
0x17ad   :  { %p2946_p3 = por %p2945_p2, %p2944_p1 }
0x17ae   :  { %2931 = vtanh.f32 %v2043_v13 }
0x17af   :  { %p2947_p4 = pnand %p2946_p3, %p2940_p0 }
0x17b6   :  { %v2930_v14 = vpop.eup %2929 }
0x17b7   :  { %v2046_v15 = vadd.f32 1.0, %v2930_v14 }
0x17b8   :  { %v2932_v16 = vpop.eup %2931 }
0x17b9   :  { %v2047_v19 = vadd.f32 1.0, %v2932_v16  ;;  %v2048_v20 = vmul.f32 %v2046_v15, %v2032_v17 }
0x17bb   :  { %v2049_v21 = vmul.f32 %v2047_v19, %v2033_v18 }
0x17bd   :  { %v2050_v22 = vpack.c.bf16 %v2049_v21, %v2048_v20 }
0x17bf   :  { %2804 = vmatmul.mubr.msk.bf16.vlgmr.msra.gmra.mrb[56].mxu0 %vm1077_vm3, %v2050_v22 }
0x1892   :  { %v2125_v24 = vpop.f32.mrb[56].mxu0 }
0x1893   :  { %v2126_v25 = vadd.f32 %v2501_v23, %v2125_v24  ;;  %v2805_v26 = vpop.f32.mrb[57].mxu0 }
0x1894   :  { %v2128_v27 = vpop.f32.mrb[58].mxu0 }
0x1895   :  { %v2129_v28 = vadd.f32 %v2501_v23, %v2128_v27  ;;  %v2806_v29 = vpop.f32.mrb[59].mxu0  ;;  %v2132_v30 = vadd.f32 %v2126_v25, %v1964_v50  ;;  %v2507_v50 = vld [vmem:[%s3574_s5 + $0xd] ss:$0 sm:$0xff] }
0x1897   :  { %v2134_v31 = vsel %vm65_vm0, %v2132_v30, 0.0  ;;  %v2133_v32 = vadd.f32 %v2129_v28, %v1965_v51 }
0x1898   :  { %2135 = vadd.xlane.f32.xlu1 %v2134_v31 }
0x1899   :  { %v2137_v2 = vsel %vm65_vm0, %v2133_v32, 0.0 }
0x189a   :  { %2138 = vadd.xlane.f32.xlu0 %v2137_v2 }
0x1925   :  { %v2136_v33 = vpop.xlane.xlu1 %2135 }
0x1926   :  { %v2140_v63 = vmul.f32 0.03125, %v2136_v33 }
0x1927   :  { %v2139_v1 = vpop.xlane.xlu0 %2138 }
0x1928   :  { %v2142_v3 = vsub.f32 %v2132_v30, %v2140_v63  ;;  %v2141_v5 = vmul.f32 0.03125, %v2139_v1 }
0x192a   :  { %v2143_v0 = vsub.f32 %v2133_v32, %v2141_v5  ;;  %v2144_v35 = vmul.f32 %v2142_v3, %v2142_v3 }
0x192c   :  { %v2146_v36 = vsel %vm65_vm0, %v2144_v35, 0.0  ;;  %v2145_v37 = vmul.f32 %v2143_v0, %v2143_v0 }
0x192d   :  { %2147 = vadd.xlane.f32.xlu1 %v2146_v36 }
0x192e   :  { %v2149_v39 = vsel %vm65_vm0, %v2145_v37, 0.0 }
0x192f   :  { %2150 = vadd.xlane.f32.xlu0 %v2149_v39 }
0x19ba   :  { %v2148_v42 = vpop.xlane.xlu1 %2147 }
0x19bb   :  { %v2152_v43 = vmul.f32 0.03125, %v2148_v42 }
0x19bc   :  { %v2151_v44 = vpop.xlane.xlu0 %2150 }
0x19bd   :  { %v2154_v45 = vadd.f32 1e-12, %v2152_v43  ;;  %v2153_v47 = vmul.f32 0.03125, %v2151_v44 }
0x19bf   :  { %2933 = vrsqrt.f32 %v2154_v45  ;;  %v2155_v48 = vadd.f32 1e-12, %v2153_v47 }
0x19c1   :  { %2935 = vrsqrt.f32 %v2155_v48 }
0x19c9   :  { %v2934_v49 = vpop.eup %2933 }
0x19ca   :  { %v2158_v51 = vmul.f32 %v2934_v49, %v2142_v3 }
0x19cb   :  { %v2936_v52 = vpop.eup %2935 }
0x19cc   :  { %v2164_v34 = vmul.f32 %v2507_v50, %v2158_v51  ;;  %v2159_v54 = vmul.f32 %v2936_v52, %v2143_v0 }
0x19ce   :  { %v2170_v38 = vadd.f32 %v2508_v53, %v2164_v34  ;;  %v2165_v55 = vmul.f32 %v2507_v50, %v2159_v54 }
0x19d0   :  { %v2171_v56 = vadd.f32 %v2508_v53, %v2165_v55  ;;  %v2172_v57 = vpack.c.bf16 %v2170_v38, %v2170_v38 }
0x19d2   :  { %v2173_v58 = vpack.c.bf16 %v2171_v56, %v2171_v56  ;;  %v2187_v60 = vunpack.c.l.b16 %v2172_v57 }
0x19d4   :  { %v2188_v59 = vunpack.c.l.b16 %v2173_v58 }
0x19d6   :  { %v2189_v61 = vrot.slane %v2188_v59, 7 }
0x19d8   :  { %v2191_v62 = vsel %vm2190_vm4, %v2189_v61, %v2187_v60 }
0x19d9   :  { %v2192_v4 = vpack.c.b16 %v2191_v62, %v2191_v62 }
0x19db   :  { %2812 = vmatmul.mubr.msk.bf16.vlgmr.msra.gmra.mrb[52].mxu1 %vm65_vm0, %v2192_v4 }
0x19dc   :  { %2819 = vmatprep.mubr.msk.bf16.mxu1 %vm2965_vm1, %v2964_v46  ;;  %2816 = vmatpush3.bf16.msra.mxu1 %v2871_v6 }
0x19dd   :  { %2817 = vmatprep.subr.bf16.mxu1 %v2964_v46  ;;  %v2513_v46 = vld [vmem:[%s3586_s17] ss:$0 sm:$0xff] }
0x19e0   :  { %2818 = vmatpush3.bf16.msra.mxu1 %v2872_v7 }
0x1aae   :  { %v2242_v9 = vpop.f32.mrb[52].mxu1 }
0x1aaf   :  { %v2243_v10 = vadd.f32 %v2509_v8, %v2242_v9  ;;  %v2813_v11 = vpop.f32.mrb[53].mxu1 }
0x1ab0   :  { %v2245_v12 = vpop.f32.mrb[54].mxu1 }
0x1ab1   :  { %2937 = vtanh.f32 %v2243_v10  ;;  %v2814_v13 = vpop.f32.mrb[55].mxu1 }
0x1abb   :  { %v2938_v14 = vpop.eup %2937 }
0x1abc   :  { %v2249_v15 = vpack.c.bf16 %v2938_v14, %v2938_v14 }
0x1abe   :  { %2820 = vmatmul.mubr.msk.bf16.vlgmr.msra.gmra.mrb[56].mxu1 %vm65_vm0, %v2249_v15 }
0x1b91   :  { %v2310_v16 = vpop.f32.mrb[56].mxu1 }
0x1b92   :  { %v2311_v17 = vadd.f32 %v2513_v46, %v2310_v16  ;;  %v2821_v18 = vpop.f32.mrb[57].mxu1 }
0x1b93   :  { %v2313_v19 = vpop.f32.mrb[58].mxu1 }
0x1b94   :  { %v2822_v20 = vpop.f32.mrb[59].mxu1  ;;  %2317 = vst.msk [vmem:[#allocation2] sm:$0x3] %vm2316_vm5, %v2311_v17 }
0x1b95   :  { %2950 = shalt.err (!%p2947_p4)
}
0x1b96   :  { %s2951_s17 = scalar_lea.hbm %s3587_s18, 32 }
0x1b97   :  { %p2952_p5 = scmp.ne.s32.totalorder %s3587_s18, %s2951_s17  ;;  %p2955_p6 = scmp.lt.u32.totalorder %s2951_s17, %s3587_s18 }
0x1b99   :  { %p2957_p7 = pnand %p2955_p6, %p2952_p5 }
0x1b9b   :  { %2960 = shalt.err (!%p2957_p7)
}
0x1b9c   :  { %2327 = dma.vmem_to_hbm [thread:$0]  %s2325_s6, 32, %s3587_s18, [#allocation3]  }
0x1b9d   :  { %2961 = dma.done.wait [#allocation3], 32  }
0x1b9e   :  { %2962 = vsyncadd [#allocation3], 4294967264 }
0x1b9f   :  { %2331 = vsyncpa [#allocation3], 1 }

</bundles_post_ra>
